<compile_context>
chip_gen: v7x
topology: tpu7x:2x2x1
jax: 0.10.0
libtpu: 0.0.40
codegen_flags: <defaults>
</compile_context>

<pallas_src>
import functools

import jax
import jax.numpy as jnp
from jax import lax
from jax.experimental import pallas as pl
from jax.experimental.pallas import tpu as pltpu


def _vmem_capacity_bytes():
    try:
        info = pltpu.get_tpu_info()
        cap = getattr(info, "vmem_capacity_bytes", None)
        if cap:
            return int(cap)
    except Exception:
        pass
    return 64 * 2**20  # conservative fallback = v7x physical VMEM


_VMEM_CAP = _vmem_capacity_bytes()
_VMEM_BUDGET = int(0.70 * _VMEM_CAP)   # working-set budget used for chunk sizing
_VMEM_LIMIT = int(0.85 * _VMEM_CAP)    # scoped limit handed to Mosaic


def _select_chunk(T, Bblk, Hp, gx_bytes, whh_bytes):
    """Largest chunk (timesteps per grid step) that fits the VMEM budget."""
    fixed = 2 * Hp * 4 * Hp * whh_bytes        # W_hh^T, double-buffered
    fixed += 4 * 2 * Bblk * Hp * 4             # h0/c0 inputs + h_n/c_n outputs (x2 buf)
    fixed += 2 * Bblk * Hp * 4                 # h/c carry scratch
    per_step = 2 * Bblk * 4 * Hp * gx_bytes    # gx block, double-buffered
    per_step += 2 * Bblk * Hp * 4              # out block, double-buffered
    per_step += Bblk * Hp * 4                  # time-major o_scr scratch
    cap = (_VMEM_BUDGET - fixed) // per_step if per_step > 0 else T
    cap = int(max(8, min(cap, 256)))
    if cap >= T:
        return T
    chunk = max(8, (cap // 8) * 8)             # out block 2nd-minor dim -> multiple of 8
    if T % chunk != 0:
        # Prefer a chunk that divides T (skips tail masking) if not much smaller.
        for c in range(chunk, 7, -8):
            if T % c == 0:
                if 2 * c >= chunk:
                    chunk = c
                break
    return chunk


def _make_lstm_kernel(seq_len, chunk, Hp, needs_mask, unroll):
    """One grid step = `chunk` timesteps of the recurrence for one batch block."""
    H3 = 3 * Hp

    def kernel(gx_ref, whh_ref, h0_ref, c0_ref,
               out_ref, hn_ref, cn_ref, h_scr, c_scr, o_scr):
        c_idx = pl.program_id(1)                 # chunk axis ("arbitrary", serial)
        last = pl.num_programs(1) - 1

        @pl.when(c_idx == 0)
        def _():
            h_scr[...] = h0_ref[...]
            c_scr[...] = c0_ref[...]

        whh = whh_ref[...]                       # (Hp, 4Hp), VMEM-resident

        def make_step(masked):
            def step(s, carry):
                h, c_state = carry
                # Only the recurrent projection runs per step; x @ W_ih^T + bias was
                # precomputed and streamed in via gx_ref.
                # NOTE: with small B the MXU M-dim is underfilled and this dot is
                # latency-bound; fuse independent sequences into B at the caller to
                # recover MXU efficiency.
                gates = (jnp.dot(h.astype(whh.dtype), whh,
                                 preferred_element_type=jnp.float32)
                         + gx_ref[s].astype(jnp.float32))       # (Bblk, 4Hp) [i,f,o,g]
                ifo = jax.nn.sigmoid(gates[:, :H3])             # contiguous, lane-aligned
                g_g = jnp.tanh(gates[:, H3:])
                i_g = ifo[:, :Hp]
                f_g = ifo[:, Hp:2 * Hp]
                o_g = ifo[:, 2 * Hp:]
                c_new = f_g * c_state + i_g * g_g
                h_new = o_g * jnp.tanh(c_new)
                if masked:
                    valid = (c_idx * chunk + s) < seq_len
                    h_new = jnp.where(valid, h_new, h)
                    c_new = jnp.where(valid, c_new, c_state)
                o_scr[s] = h_new                                # dense time-major store
                return h_new, c_new
            return step

        def run(masked):
            h_fin, c_fin = lax.fori_loop(0, chunk, make_step(masked),
                                         (h_scr[...], c_scr[...]),
                                         unroll=unroll)
            h_scr[...] = h_fin
            c_scr[...] = c_fin

        if needs_mask:
            # Only the final chunk can contain padded tail steps; keep the per-step
            # selects out of every other chunk.
            @pl.when(c_idx < last)
            def _():
                run(False)

            @pl.when(c_idx == last)
            def _():
                run(True)
        else:
            run(False)

        # Relayout the chunk's time-major scratch into the batch-major out block.
        # Static indices -> plain static (masked) stores; rides the vst slot and
        # removes the wrapper-side (B,T,H) HBM transpose entirely.
        for s in range(chunk):
            out_ref[:, s:s + 1, :] = o_scr[s][:, None, :]

        @pl.when(c_idx == last)
        def _():
            hn_ref[...] = h_scr[...]
            cn_ref[...] = c_scr[...]

    return kernel


@functools.partial(jax.jit,
                   static_argnames=("chunk", "gx_dtype", "whh_dtype", "batch_blocks"))
def lstm_forward(x, hs, w_ih, w_hh, b_ih, b_hh, *, chunk=None,
                 gx_dtype=jnp.bfloat16, whh_dtype=jnp.bfloat16, batch_blocks=None):
    """Mirrors `out, hs = nn.LSTM(input_size, hidden_size, 1, batch_first=True)(x, hs)`.

    x:    (B, T, I) float32
    hs:   tuple (h0, c0), each (1, B, H)
    w_ih: (4H, I), w_hh: (4H, H), b_ih/b_hh: (4H,)  (PyTorch parameter shapes)
    Returns: out (B, T, H), (h_n (1, B, H), c_n (1, B, H))
    """
    B, T, I = x.shape
    H = w_hh.shape[1]
    Hp = ((H + 127) // 128) * 128              # lane-align the hidden dim
    h0, c0 = hs

    # Reorder PyTorch's [i, f, g, o] gate stacking to [i, f, o, g] and zero-pad each
    # gate block from H to Hp rows (padded lanes stay exactly 0 through the recurrence).
    def _reorder_pad_rows(w):
        i, f, g, o = w[:H], w[H:2 * H], w[2 * H:3 * H], w[3 * H:4 * H]
        pad = [(0, Hp - H)] + [(0, 0)] * (w.ndim - 1)
        return jnp.concatenate([jnp.pad(blk, pad) for blk in (i, f, o, g)], axis=0)

    w_ih_p = _reorder_pad_rows(w_ih.astype(jnp.float32))                  # (4Hp, I)
    w_hh_p = _reorder_pad_rows(jnp.pad(w_hh.astype(jnp.float32),
                                       ((0, 0), (0, Hp - H))))            # (4Hp, Hp)
    bias_p = _reorder_pad_rows((b_ih + b_hh).astype(jnp.float32))         # (4Hp,)

    # Batch blocking: on v7x mark the batch axis "parallel" so each TensorCore runs an
    # independent recurrence over a batch half; harmless (size-1) on 1-TC chips.
    if batch_blocks is None:
        batch_blocks = 2 if (B >= 64 and B % 2 == 0 and (B // 2) % 8 == 0) else 1
    if B % batch_blocks != 0 or (batch_blocks > 1 and (B // batch_blocks) % 8 != 0):
        batch_blocks = 1
    Bblk = B // batch_blocks

    gx_bytes = jnp.dtype(gx_dtype).itemsize
    whh_bytes = jnp.dtype(whh_dtype).itemsize
    if chunk is None:
        chunk = _select_chunk(T, Bblk, Hp, gx_bytes, whh_bytes)
    chunk = max(1, min(int(chunk), T))
    if chunk < T:
        chunk = max(8, (chunk // 8) * 8)       # (8,128) rule on the out block
    num_chunks = -(-T // chunk)
    T_pad = num_chunks * chunk
    needs_mask = (T_pad != T)

    # Hoisted input projection, produced directly in the streamed dtype.
    xla_prec = (lax.Precision.HIGHEST
                if jnp.dtype(gx_dtype) == jnp.dtype(jnp.float32)
                else lax.Precision.DEFAULT)
    x_tbi = jnp.transpose(x, (1, 0, 2)).astype(jnp.float32)               # (T, B, I)
    gx = (jnp.dot(x_tbi.reshape(T * B, I), w_ih_p.T,
                  preferred_element_type=jnp.float32, precision=xla_prec)
          + bias_p).astype(gx_dtype).reshape(T, B, 4 * Hp)
    if needs_mask:
        gx = jnp.pad(gx, ((0, T_pad - T), (0, 0), (0, 0)))
    # TODO(synk): consider an fp8 gx stream on v7x if the accuracy budget allows.

    whh_t = jnp.transpose(w_hh_p).astype(whh_dtype)                       # (Hp, 4Hp)
    h0_2d = jnp.pad(h0[0].astype(jnp.float32), ((0, 0), (0, Hp - H)))     # (B, Hp)
    c0_2d = jnp.pad(c0[0].astype(jnp.float32), ((0, 0), (0, Hp - H)))

    # vreg-pressure-aware unroll: unroll when the live per-step gate tile is small.
    if Bblk * 4 * Hp * 4 <= 128 * 1024:
        unroll = max(u for u in (8, 4, 2, 1) if chunk % u == 0)
    else:
        unroll = 1

    kernel = _make_lstm_kernel(T, chunk, Hp, needs_mask, unroll)

    out_bth, h_n, c_n = pl.pallas_call(
        kernel,
        out_shape=(
            jax.ShapeDtypeStruct((B, T_pad, Hp), jnp.float32),
            jax.ShapeDtypeStruct((B, Hp), jnp.float32),
            jax.ShapeDtypeStruct((B, Hp), jnp.float32),
        ),
        grid_spec=pltpu.PrefetchScalarGridSpec(
            num_scalar_prefetch=0,
            grid=(batch_blocks, num_chunks),
            in_specs=[
                pl.BlockSpec((chunk, Bblk, 4 * Hp), lambda b, c: (c, b, 0)),  # gx stream
                # TODO(synk): single-buffer the three constant-index inputs below
                # (pipeline_mode=pl.Buffered(1)) once verified on the target Mosaic
                # version; reclaims the second W_hh^T copy inside v7x's 64 MiB VMEM.
                pl.BlockSpec((Hp, 4 * Hp), lambda b, c: (0, 0)),              # W_hh^T
                pl.BlockSpec((Bblk, Hp), lambda b, c: (b, 0)),                # h0
                pl.BlockSpec((Bblk, Hp), lambda b, c: (b, 0)),                # c0
            ],
            out_specs=[
                pl.BlockSpec((Bblk, chunk, Hp), lambda b, c: (b, c, 0)),      # out (B-major)
                pl.BlockSpec((Bblk, Hp), lambda b, c: (b, 0)),                # h_n
                pl.BlockSpec((Bblk, Hp), lambda b, c: (b, 0)),                # c_n
            ],
            scratch_shapes=[
                pltpu.VMEM((Bblk, Hp), jnp.float32),           # h carry
                pltpu.VMEM((Bblk, Hp), jnp.float32),           # c carry
                pltpu.VMEM((chunk, Bblk, Hp), jnp.float32),    # time-major chunk slab
            ],
        ),
        compiler_params=pltpu.CompilerParams(
            dimension_semantics=("parallel", "arbitrary"),     # batch || , time serial
            vmem_limit_bytes=_VMEM_LIMIT,
        ),
    )(gx, whh_t, h0_2d, c0_2d)

    out = out_bth[:, :T, :H]                                   # already batch-major
    return out, (h_n[None, :, :H], c_n[None, :, :H])


def _lstm_reference(x, hs, w_ih, w_hh, b_ih, b_hh):
    """Pure-JAX reference implementing PyTorch nn.LSTM math (full f32 precision)."""
    h, c = hs[0][0], hs[1][0]
    H = w_hh.shape[1]
    bias = b_ih + b_hh
    hp = lax.Precision.HIGHEST

    def step(carry, x_t):
        h, c = carry
        gates = (jnp.dot(x_t, w_ih.T, precision=hp)
                 + jnp.dot(h, w_hh.T, precision=hp) + bias)
        i = jax.nn.sigmoid(gates[:, 0:H])
        f = jax.nn.sigmoid(gates[:, H:2 * H])
        g = jnp.tanh(gates[:, 2 * H:3 * H])
        o = jax.nn.sigmoid(gates[:, 3 * H:4 * H])
        c_new = f * c + i * g
        h_new = o * jnp.tanh(c_new)
        return (h_new, c_new), h_new

    (h_n, c_n), out_tbh = lax.scan(step, (h, c), jnp.transpose(x, (1, 0, 2)))
    return jnp.transpose(out_tbh, (1, 0, 2)), (h_n[None], c_n[None])


if __name__ == "__main__":
    key = jax.random.PRNGKey(0)
    I, H = 16, 32          # input_size = len(hostnames) stand-in; hidden_size stand-in
    kp1, kp2, kp3, kp4, kx1, kx2, kx3 = jax.random.split(key, 7)

    bound = 1.0 / (H ** 0.5)   # PyTorch U(-1/sqrt(H), 1/sqrt(H)) init
    w_ih = jax.random.uniform(kp1, (4 * H, I), jnp.float32, -bound, bound)
    w_hh = jax.random.uniform(kp2, (4 * H, H), jnp.float32, -bound, bound)
    b_ih = jax.random.uniform(kp3, (4 * H,), jnp.float32, -bound, bound)
    b_hh = jax.random.uniform(kp4, (4 * H,), jnp.float32, -bound, bound)

    # --- Test 1: f32 operands, single chunk (chunk == T) -----------------------------
    B, T = 8, 8
    x = jax.random.normal(kx1, (B, T, I), jnp.float32)
    hs = (jnp.zeros((1, B, H), jnp.float32), jnp.zeros((1, B, H), jnp.float32))
    out, (h_n, c_n) = lstm_forward(x, hs, w_ih, w_hh, b_ih, b_hh,
                                   gx_dtype=jnp.float32, whh_dtype=jnp.float32)
    jax.block_until_ready((out, h_n, c_n))
    out_r, (h_r, c_r) = _lstm_reference(x, hs, w_ih, w_hh, b_ih, b_hh)
    assert out.shape == (B, T, H) and h_n.shape == (1, B, H)
    assert jnp.allclose(out, out_r, atol=1e-3, rtol=1e-3)
    assert jnp.allclose(h_n, h_r, atol=1e-3, rtol=1e-3)
    assert jnp.allclose(c_n, c_r, atol=1e-3, rtol=1e-3)

    # --- Test 2: default bf16 stream/weights, multi-chunk with padded tail mask ------
    B, T = 8, 10
    x = jax.random.normal(kx2, (B, T, I), jnp.float32)
    hs = (jnp.zeros((1, B, H), jnp.float32), jnp.zeros((1, B, H), jnp.float32))
    out, (h_n, c_n) = lstm_forward(x, hs, w_ih, w_hh, b_ih, b_hh, chunk=8)
    jax.block_until_ready((out, h_n, c_n))
    out_r, (h_r, c_r) = _lstm_reference(x, hs, w_ih, w_hh, b_ih, b_hh)
    assert out.shape == (B, T, H)
    assert float(jnp.max(jnp.abs(out - out_r))) < 5e-2
    assert float(jnp.max(jnp.abs(h_n - h_r))) < 5e-2
    assert float(jnp.max(jnp.abs(c_n - c_r))) < 5e-2

    # --- Test 3: batch-blocked grid (2 "parallel" batch blocks), f32 -----------------
    B, T = 16, 8
    x = jax.random.normal(kx3, (B, T, I), jnp.float32)
    hs = (jnp.zeros((1, B, H), jnp.float32), jnp.zeros((1, B, H), jnp.float32))
    out, (h_n, c_n) = lstm_forward(x, hs, w_ih, w_hh, b_ih, b_hh,
                                   gx_dtype=jnp.float32, whh_dtype=jnp.float32,
                                   batch_blocks=2)
    jax.block_until_ready((out, h_n, c_n))
    out_r, (h_r, c_r) = _lstm_reference(x, hs, w_ih, w_hh, b_ih, b_hh)
    assert jnp.allclose(out, out_r, atol=1e-3, rtol=1e-3)
    assert jnp.allclose(h_n, h_r, atol=1e-3, rtol=1e-3)
    assert jnp.allclose(c_n, c_r, atol=1e-3, rtol=1e-3)

    print("KERNEL_OK")
</pallas_src>

<mosaic_0001>
module attributes {stable_mosaic.version = 11 : i64} {
  func.func @kernel(%arg0: i32, %arg1: i32, %arg2: memref<8x8x512xf32, #tpu.memory_space<vmem>>, %arg3: memref<128x512xf32, #tpu.memory_space<vmem>>, %arg4: memref<8x128xf32, #tpu.memory_space<vmem>>, %arg5: memref<8x128xf32, #tpu.memory_space<vmem>>, %arg6: memref<8x8x128xf32, #tpu.memory_space<vmem>>, %arg7: memref<8x128xf32, #tpu.memory_space<vmem>>, %arg8: memref<8x128xf32, #tpu.memory_space<vmem>>, %arg9: memref<8x128xf32, #tpu.memory_space<vmem>>, %arg10: memref<8x128xf32, #tpu.memory_space<vmem>>, %arg11: memref<8x8x128xf32, #tpu.memory_space<vmem>>) attributes {dimension_semantics = [#tpu.dimension_semantics<parallel>, #tpu.dimension_semantics<arbitrary>], iteration_bounds = array<i64: 1, 1>, scalar_prefetch = 0 : i64, scratch_operands = 3 : i64, tpu.core_type = #tpu.core_type<tc>, window_params = [{transform_indices = @transform_0, window_bounds = array<i64: 8, 8, 512>}, {pipeline_mode = #tpu.pipeline_mode<synchronous>, transform_indices = @transform_1, window_bounds = array<i64: 128, 512>}, {transform_indices = @transform_2, window_bounds = array<i64: 8, 128>}, {transform_indices = @transform_3, window_bounds = array<i64: 8, 128>}, {transform_indices = @transform_4, window_bounds = array<i64: 8, 8, 128>}, {transform_indices = @transform_5, window_bounds = array<i64: 8, 128>}, {transform_indices = @transform_6, window_bounds = array<i64: 8, 128>}]} {
    %c0_i32 = arith.constant 0 : i32
    %0 = arith.cmpi eq, %arg1, %c0_i32 : i32
    %1 = arith.extui %0 : i1 to i32
    %c0_i32_0 = arith.constant 0 : i32
    %2 = arith.cmpi ne, %1, %c0_i32_0 : i32
    scf.if %2 {
      %c0_101 = arith.constant 0 : index
      %c0_102 = arith.constant 0 : index
      %243 = vector.load %arg4[%c0_101, %c0_102] : memref<8x128xf32, #tpu.memory_space<vmem>>, vector<8x128xf32>
      %c0_103 = arith.constant 0 : index
      %c0_104 = arith.constant 0 : index
      %244 = vector.load %arg9[%c0_103, %c0_104] : memref<8x128xf32, #tpu.memory_space<vmem>>, vector<8x128xf32>
      tpu.vector_store %arg9[%c0_103, %c0_104], %243 {strides = array<i32>} : memref<8x128xf32, #tpu.memory_space<vmem>>, vector<8x128xf32>,
      %c0_105 = arith.constant 0 : index
      %c0_106 = arith.constant 0 : index
      %245 = vector.load %arg5[%c0_105, %c0_106] : memref<8x128xf32, #tpu.memory_space<vmem>>, vector<8x128xf32>
      %c0_107 = arith.constant 0 : index
      %c0_108 = arith.constant 0 : index
      %246 = vector.load %arg10[%c0_107, %c0_108] : memref<8x128xf32, #tpu.memory_space<vmem>>, vector<8x128xf32>
      tpu.vector_store %arg10[%c0_107, %c0_108], %245 {strides = array<i32>} : memref<8x128xf32, #tpu.memory_space<vmem>>, vector<8x128xf32>,
    } else {
    }
    %c0 = arith.constant 0 : index
    %c0_1 = arith.constant 0 : index
    %3 = vector.load %arg3[%c0, %c0_1] : memref<128x512xf32, #tpu.memory_space<vmem>>, vector<128x512xf32>
    %c0_2 = arith.constant 0 : index
    %c0_3 = arith.constant 0 : index
    %4 = vector.load %arg9[%c0_2, %c0_3] : memref<8x128xf32, #tpu.memory_space<vmem>>, vector<8x128xf32>
    %c0_4 = arith.constant 0 : index
    %c0_5 = arith.constant 0 : index
    %5 = vector.load %arg10[%c0_4, %c0_5] : memref<8x128xf32, #tpu.memory_space<vmem>>, vector<8x128xf32>
    %c0_i32_6 = arith.constant 0 : i32
    %cst = arith.constant dense<0.000000e+00> : vector<8x512xf32>
    %6 = tpu.matmul %4, %3, %cst {dimension_numbers = #tpu.dot_dimension_numbers<[1], [0], [0], [1], [0, 0, 1, 1], [], []>} : vector<8x128xf32>, vector<128x512xf32>, vector<8x512xf32> -> vector<8x512xf32>
    %7 = arith.index_cast %c0_i32_6 : i32 to index
    %c0_7 = arith.constant 0 : index
    %c0_8 = arith.constant 0 : index
    %8 = vector.load %arg2[%7, %c0_7, %c0_8] : memref<8x8x512xf32, #tpu.memory_space<vmem>>, vector<1x8x512xf32>
    %9 = vector.shape_cast %8 : vector<1x8x512xf32> to vector<8x512xf32>
    %10 = arith.addf %6, %9 : vector<8x512xf32>
    %11 = vector.extract_strided_slice %10 {offsets = [0, 0], sizes = [8, 384], strides = [1, 1]} : vector<8x512xf32> to vector<8x384xf32>
    %12 = arith.negf %11 : vector<8x384xf32>
    %13 = math.exp %12 : vector<8x384xf32>
    %cst_9 = arith.constant 1.000000e+00 : f32
    %14 = vector.broadcast %cst_9 : f32 to vector<8x384xf32>
    %15 = arith.addf %14, %13 : vector<8x384xf32>
    %16 = arith.divf %14, %15 : vector<8x384xf32>
    %17 = vector.extract_strided_slice %10 {offsets = [0, 384], sizes = [8, 128], strides = [1, 1]} : vector<8x512xf32> to vector<8x128xf32>
    %18 = math.tanh %17 : vector<8x128xf32>
    %19 = vector.extract_strided_slice %16 {offsets = [0, 0], sizes = [8, 128], strides = [1, 1]} : vector<8x384xf32> to vector<8x128xf32>
    %20 = vector.extract_strided_slice %16 {offsets = [0, 128], sizes = [8, 128], strides = [1, 1]} : vector<8x384xf32> to vector<8x128xf32>
    %21 = vector.extract_strided_slice %16 {offsets = [0, 256], sizes = [8, 128], strides = [1, 1]} : vector<8x384xf32> to vector<8x128xf32>
    %22 = arith.mulf %20, %5 : vector<8x128xf32>
    %23 = arith.mulf %19, %18 : vector<8x128xf32>
    %24 = arith.addf %22, %23 : vector<8x128xf32>
    %25 = math.tanh %24 : vector<8x128xf32>
    %26 = arith.mulf %21, %25 : vector<8x128xf32>
    %27 = arith.index_cast %c0_i32_6 : i32 to index
    %c0_10 = arith.constant 0 : index
    %c0_11 = arith.constant 0 : index
    %28 = vector.load %arg11[%27, %c0_10, %c0_11] : memref<8x8x128xf32, #tpu.memory_space<vmem>>, vector<1x8x128xf32>
    %29 = vector.shape_cast %28 : vector<1x8x128xf32> to vector<8x128xf32>
    %30 = vector.shape_cast %26 : vector<8x128xf32> to vector<1x8x128xf32>
    tpu.vector_store %arg11[%27, %c0_10, %c0_11], %30 {strides = array<i32>} : memref<8x8x128xf32, #tpu.memory_space<vmem>>, vector<1x8x128xf32>,
    %c1_i32 = arith.constant 1 : i32
    %cst_12 = arith.constant dense<0.000000e+00> : vector<8x512xf32>
    %31 = tpu.matmul %26, %3, %cst_12 {dimension_numbers = #tpu.dot_dimension_numbers<[1], [0], [0], [1], [0, 0, 1, 1], [], []>} : vector<8x128xf32>, vector<128x512xf32>, vector<8x512xf32> -> vector<8x512xf32>
    %32 = arith.index_cast %c1_i32 : i32 to index
    %c0_13 = arith.constant 0 : index
    %c0_14 = arith.constant 0 : index
    %33 = vector.load %arg2[%32, %c0_13, %c0_14] : memref<8x8x512xf32, #tpu.memory_space<vmem>>, vector<1x8x512xf32>
    %34 = vector.shape_cast %33 : vector<1x8x512xf32> to vector<8x512xf32>
    %35 = arith.addf %31, %34 : vector<8x512xf32>
    %36 = vector.extract_strided_slice %35 {offsets = [0, 0], sizes = [8, 384], strides = [1, 1]} : vector<8x512xf32> to vector<8x384xf32>
    %37 = arith.negf %36 : vector<8x384xf32>
    %38 = math.exp %37 : vector<8x384xf32>
    %cst_15 = arith.constant 1.000000e+00 : f32
    %39 = vector.broadcast %cst_15 : f32 to vector<8x384xf32>
    %40 = arith.addf %39, %38 : vector<8x384xf32>
    %41 = arith.divf %39, %40 : vector<8x384xf32>
    %42 = vector.extract_strided_slice %35 {offsets = [0, 384], sizes = [8, 128], strides = [1, 1]} : vector<8x512xf32> to vector<8x128xf32>
    %43 = math.tanh %42 : vector<8x128xf32>
    %44 = vector.extract_strided_slice %41 {offsets = [0, 0], sizes = [8, 128], strides = [1, 1]} : vector<8x384xf32> to vector<8x128xf32>
    %45 = vector.extract_strided_slice %41 {offsets = [0, 128], sizes = [8, 128], strides = [1, 1]} : vector<8x384xf32> to vector<8x128xf32>
    %46 = vector.extract_strided_slice %41 {offsets = [0, 256], sizes = [8, 128], strides = [1, 1]} : vector<8x384xf32> to vector<8x128xf32>
    %47 = arith.mulf %45, %24 : vector<8x128xf32>
    %48 = arith.mulf %44, %43 : vector<8x128xf32>
    %49 = arith.addf %47, %48 : vector<8x128xf32>
    %50 = math.tanh %49 : vector<8x128xf32>
    %51 = arith.mulf %46, %50 : vector<8x128xf32>
    %52 = arith.index_cast %c1_i32 : i32 to index
    %c0_16 = arith.constant 0 : index
    %c0_17 = arith.constant 0 : index
    %53 = vector.load %arg11[%52, %c0_16, %c0_17] : memref<8x8x128xf32, #tpu.memory_space<vmem>>, vector<1x8x128xf32>
    %54 = vector.shape_cast %53 : vector<1x8x128xf32> to vector<8x128xf32>
    %55 = vector.shape_cast %51 : vector<8x128xf32> to vector<1x8x128xf32>
    tpu.vector_store %arg11[%52, %c0_16, %c0_17], %55 {strides = array<i32>} : memref<8x8x128xf32, #tpu.memory_space<vmem>>, vector<1x8x128xf32>,
    %c2_i32 = arith.constant 2 : i32
    %cst_18 = arith.constant dense<0.000000e+00> : vector<8x512xf32>
    %56 = tpu.matmul %51, %3, %cst_18 {dimension_numbers = #tpu.dot_dimension_numbers<[1], [0], [0], [1], [0, 0, 1, 1], [], []>} : vector<8x128xf32>, vector<128x512xf32>, vector<8x512xf32> -> vector<8x512xf32>
    %57 = arith.index_cast %c2_i32 : i32 to index
    %c0_19 = arith.constant 0 : index
    %c0_20 = arith.constant 0 : index
    %58 = vector.load %arg2[%57, %c0_19, %c0_20] : memref<8x8x512xf32, #tpu.memory_space<vmem>>, vector<1x8x512xf32>
    %59 = vector.shape_cast %58 : vector<1x8x512xf32> to vector<8x512xf32>
    %60 = arith.addf %56, %59 : vector<8x512xf32>
    %61 = vector.extract_strided_slice %60 {offsets = [0, 0], sizes = [8, 384], strides = [1, 1]} : vector<8x512xf32> to vector<8x384xf32>
    %62 = arith.negf %61 : vector<8x384xf32>
    %63 = math.exp %62 : vector<8x384xf32>
    %cst_21 = arith.constant 1.000000e+00 : f32
    %64 = vector.broadcast %cst_21 : f32 to vector<8x384xf32>
    %65 = arith.addf %64, %63 : vector<8x384xf32>
    %66 = arith.divf %64, %65 : vector<8x384xf32>
    %67 = vector.extract_strided_slice %60 {offsets = [0, 384], sizes = [8, 128], strides = [1, 1]} : vector<8x512xf32> to vector<8x128xf32>
    %68 = math.tanh %67 : vector<8x128xf32>
    %69 = vector.extract_strided_slice %66 {offsets = [0, 0], sizes = [8, 128], strides = [1, 1]} : vector<8x384xf32> to vector<8x128xf32>
    %70 = vector.extract_strided_slice %66 {offsets = [0, 128], sizes = [8, 128], strides = [1, 1]} : vector<8x384xf32> to vector<8x128xf32>
    %71 = vector.extract_strided_slice %66 {offsets = [0, 256], sizes = [8, 128], strides = [1, 1]} : vector<8x384xf32> to vector<8x128xf32>
    %72 = arith.mulf %70, %49 : vector<8x128xf32>
    %73 = arith.mulf %69, %68 : vector<8x128xf32>
    %74 = arith.addf %72, %73 : vector<8x128xf32>
    %75 = math.tanh %74 : vector<8x128xf32>
    %76 = arith.mulf %71, %75 : vector<8x128xf32>
    %77 = arith.index_cast %c2_i32 : i32 to index
    %c0_22 = arith.constant 0 : index
    %c0_23 = arith.constant 0 : index
    %78 = vector.load %arg11[%77, %c0_22, %c0_23] : memref<8x8x128xf32, #tpu.memory_space<vmem>>, vector<1x8x128xf32>
    %79 = vector.shape_cast %78 : vector<1x8x128xf32> to vector<8x128xf32>
    %80 = vector.shape_cast %76 : vector<8x128xf32> to vector<1x8x128xf32>
    tpu.vector_store %arg11[%77, %c0_22, %c0_23], %80 {strides = array<i32>} : memref<8x8x128xf32, #tpu.memory_space<vmem>>, vector<1x8x128xf32>,
    %c3_i32 = arith.constant 3 : i32
    %cst_24 = arith.constant dense<0.000000e+00> : vector<8x512xf32>
    %81 = tpu.matmul %76, %3, %cst_24 {dimension_numbers = #tpu.dot_dimension_numbers<[1], [0], [0], [1], [0, 0, 1, 1], [], []>} : vector<8x128xf32>, vector<128x512xf32>, vector<8x512xf32> -> vector<8x512xf32>
    %82 = arith.index_cast %c3_i32 : i32 to index
    %c0_25 = arith.constant 0 : index
    %c0_26 = arith.constant 0 : index
    %83 = vector.load %arg2[%82, %c0_25, %c0_26] : memref<8x8x512xf32, #tpu.memory_space<vmem>>, vector<1x8x512xf32>
    %84 = vector.shape_cast %83 : vector<1x8x512xf32> to vector<8x512xf32>
    %85 = arith.addf %81, %84 : vector<8x512xf32>
    %86 = vector.extract_strided_slice %85 {offsets = [0, 0], sizes = [8, 384], strides = [1, 1]} : vector<8x512xf32> to vector<8x384xf32>
    %87 = arith.negf %86 : vector<8x384xf32>
    %88 = math.exp %87 : vector<8x384xf32>
    %cst_27 = arith.constant 1.000000e+00 : f32
    %89 = vector.broadcast %cst_27 : f32 to vector<8x384xf32>
    %90 = arith.addf %89, %88 : vector<8x384xf32>
    %91 = arith.divf %89, %90 : vector<8x384xf32>
    %92 = vector.extract_strided_slice %85 {offsets = [0, 384], sizes = [8, 128], strides = [1, 1]} : vector<8x512xf32> to vector<8x128xf32>
    %93 = math.tanh %92 : vector<8x128xf32>
    %94 = vector.extract_strided_slice %91 {offsets = [0, 0], sizes = [8, 128], strides = [1, 1]} : vector<8x384xf32> to vector<8x128xf32>
    %95 = vector.extract_strided_slice %91 {offsets = [0, 128], sizes = [8, 128], strides = [1, 1]} : vector<8x384xf32> to vector<8x128xf32>
    %96 = vector.extract_strided_slice %91 {offsets = [0, 256], sizes = [8, 128], strides = [1, 1]} : vector<8x384xf32> to vector<8x128xf32>
    %97 = arith.mulf %95, %74 : vector<8x128xf32>
    %98 = arith.mulf %94, %93 : vector<8x128xf32>
    %99 = arith.addf %97, %98 : vector<8x128xf32>
    %100 = math.tanh %99 : vector<8x128xf32>
    %101 = arith.mulf %96, %100 : vector<8x128xf32>
    %102 = arith.index_cast %c3_i32 : i32 to index
    %c0_28 = arith.constant 0 : index
    %c0_29 = arith.constant 0 : index
    %103 = vector.load %arg11[%102, %c0_28, %c0_29] : memref<8x8x128xf32, #tpu.memory_space<vmem>>, vector<1x8x128xf32>
    %104 = vector.shape_cast %103 : vector<1x8x128xf32> to vector<8x128xf32>
    %105 = vector.shape_cast %101 : vector<8x128xf32> to vector<1x8x128xf32>
    tpu.vector_store %arg11[%102, %c0_28, %c0_29], %105 {strides = array<i32>} : memref<8x8x128xf32, #tpu.memory_space<vmem>>, vector<1x8x128xf32>,
    %c4_i32 = arith.constant 4 : i32
    %cst_30 = arith.constant dense<0.000000e+00> : vector<8x512xf32>
    %106 = tpu.matmul %101, %3, %cst_30 {dimension_numbers = #tpu.dot_dimension_numbers<[1], [0], [0], [1], [0, 0, 1, 1], [], []>} : vector<8x128xf32>, vector<128x512xf32>, vector<8x512xf32> -> vector<8x512xf32>
    %107 = arith.index_cast %c4_i32 : i32 to index
    %c0_31 = arith.constant 0 : index
    %c0_32 = arith.constant 0 : index
    %108 = vector.load %arg2[%107, %c0_31, %c0_32] : memref<8x8x512xf32, #tpu.memory_space<vmem>>, vector<1x8x512xf32>
    %109 = vector.shape_cast %108 : vector<1x8x512xf32> to vector<8x512xf32>
    %110 = arith.addf %106, %109 : vector<8x512xf32>
    %111 = vector.extract_strided_slice %110 {offsets = [0, 0], sizes = [8, 384], strides = [1, 1]} : vector<8x512xf32> to vector<8x384xf32>
    %112 = arith.negf %111 : vector<8x384xf32>
    %113 = math.exp %112 : vector<8x384xf32>
    %cst_33 = arith.constant 1.000000e+00 : f32
    %114 = vector.broadcast %cst_33 : f32 to vector<8x384xf32>
    %115 = arith.addf %114, %113 : vector<8x384xf32>
    %116 = arith.divf %114, %115 : vector<8x384xf32>
    %117 = vector.extract_strided_slice %110 {offsets = [0, 384], sizes = [8, 128], strides = [1, 1]} : vector<8x512xf32> to vector<8x128xf32>
    %118 = math.tanh %117 : vector<8x128xf32>
    %119 = vector.extract_strided_slice %116 {offsets = [0, 0], sizes = [8, 128], strides = [1, 1]} : vector<8x384xf32> to vector<8x128xf32>
    %120 = vector.extract_strided_slice %116 {offsets = [0, 128], sizes = [8, 128], strides = [1, 1]} : vector<8x384xf32> to vector<8x128xf32>
    %121 = vector.extract_strided_slice %116 {offsets = [0, 256], sizes = [8, 128], strides = [1, 1]} : vector<8x384xf32> to vector<8x128xf32>
    %122 = arith.mulf %120, %99 : vector<8x128xf32>
    %123 = arith.mulf %119, %118 : vector<8x128xf32>
    %124 = arith.addf %122, %123 : vector<8x128xf32>
    %125 = math.tanh %124 : vector<8x128xf32>
    %126 = arith.mulf %121, %125 : vector<8x128xf32>
    %127 = arith.index_cast %c4_i32 : i32 to index
    %c0_34 = arith.constant 0 : index
    %c0_35 = arith.constant 0 : index
    %128 = vector.load %arg11[%127, %c0_34, %c0_35] : memref<8x8x128xf32, #tpu.memory_space<vmem>>, vector<1x8x128xf32>
    %129 = vector.shape_cast %128 : vector<1x8x128xf32> to vector<8x128xf32>
    %130 = vector.shape_cast %126 : vector<8x128xf32> to vector<1x8x128xf32>
    tpu.vector_store %arg11[%127, %c0_34, %c0_35], %130 {strides = array<i32>} : memref<8x8x128xf32, #tpu.memory_space<vmem>>, vector<1x8x128xf32>,
    %c5_i32 = arith.constant 5 : i32
    %cst_36 = arith.constant dense<0.000000e+00> : vector<8x512xf32>
    %131 = tpu.matmul %126, %3, %cst_36 {dimension_numbers = #tpu.dot_dimension_numbers<[1], [0], [0], [1], [0, 0, 1, 1], [], []>} : vector<8x128xf32>, vector<128x512xf32>, vector<8x512xf32> -> vector<8x512xf32>
    %132 = arith.index_cast %c5_i32 : i32 to index
    %c0_37 = arith.constant 0 : index
    %c0_38 = arith.constant 0 : index
    %133 = vector.load %arg2[%132, %c0_37, %c0_38] : memref<8x8x512xf32, #tpu.memory_space<vmem>>, vector<1x8x512xf32>
    %134 = vector.shape_cast %133 : vector<1x8x512xf32> to vector<8x512xf32>
    %135 = arith.addf %131, %134 : vector<8x512xf32>
    %136 = vector.extract_strided_slice %135 {offsets = [0, 0], sizes = [8, 384], strides = [1, 1]} : vector<8x512xf32> to vector<8x384xf32>
    %137 = arith.negf %136 : vector<8x384xf32>
    %138 = math.exp %137 : vector<8x384xf32>
    %cst_39 = arith.constant 1.000000e+00 : f32
    %139 = vector.broadcast %cst_39 : f32 to vector<8x384xf32>
    %140 = arith.addf %139, %138 : vector<8x384xf32>
    %141 = arith.divf %139, %140 : vector<8x384xf32>
    %142 = vector.extract_strided_slice %135 {offsets = [0, 384], sizes = [8, 128], strides = [1, 1]} : vector<8x512xf32> to vector<8x128xf32>
    %143 = math.tanh %142 : vector<8x128xf32>
    %144 = vector.extract_strided_slice %141 {offsets = [0, 0], sizes = [8, 128], strides = [1, 1]} : vector<8x384xf32> to vector<8x128xf32>
    %145 = vector.extract_strided_slice %141 {offsets = [0, 128], sizes = [8, 128], strides = [1, 1]} : vector<8x384xf32> to vector<8x128xf32>
    %146 = vector.extract_strided_slice %141 {offsets = [0, 256], sizes = [8, 128], strides = [1, 1]} : vector<8x384xf32> to vector<8x128xf32>
    %147 = arith.mulf %145, %124 : vector<8x128xf32>
    %148 = arith.mulf %144, %143 : vector<8x128xf32>
    %149 = arith.addf %147, %148 : vector<8x128xf32>
    %150 = math.tanh %149 : vector<8x128xf32>
    %151 = arith.mulf %146, %150 : vector<8x128xf32>
    %152 = arith.index_cast %c5_i32 : i32 to index
    %c0_40 = arith.constant 0 : index
    %c0_41 = arith.constant 0 : index
    %153 = vector.load %arg11[%152, %c0_40, %c0_41] : memref<8x8x128xf32, #tpu.memory_space<vmem>>, vector<1x8x128xf32>
    %154 = vector.shape_cast %153 : vector<1x8x128xf32> to vector<8x128xf32>
    %155 = vector.shape_cast %151 : vector<8x128xf32> to vector<1x8x128xf32>
    tpu.vector_store %arg11[%152, %c0_40, %c0_41], %155 {strides = array<i32>} : memref<8x8x128xf32, #tpu.memory_space<vmem>>, vector<1x8x128xf32>,
    %c6_i32 = arith.constant 6 : i32
    %cst_42 = arith.constant dense<0.000000e+00> : vector<8x512xf32>
    %156 = tpu.matmul %151, %3, %cst_42 {dimension_numbers = #tpu.dot_dimension_numbers<[1], [0], [0], [1], [0, 0, 1, 1], [], []>} : vector<8x128xf32>, vector<128x512xf32>, vector<8x512xf32> -> vector<8x512xf32>
    %157 = arith.index_cast %c6_i32 : i32 to index
    %c0_43 = arith.constant 0 : index
    %c0_44 = arith.constant 0 : index
    %158 = vector.load %arg2[%157, %c0_43, %c0_44] : memref<8x8x512xf32, #tpu.memory_space<vmem>>, vector<1x8x512xf32>
    %159 = vector.shape_cast %158 : vector<1x8x512xf32> to vector<8x512xf32>
    %160 = arith.addf %156, %159 : vector<8x512xf32>
    %161 = vector.extract_strided_slice %160 {offsets = [0, 0], sizes = [8, 384], strides = [1, 1]} : vector<8x512xf32> to vector<8x384xf32>
    %162 = arith.negf %161 : vector<8x384xf32>
    %163 = math.exp %162 : vector<8x384xf32>
    %cst_45 = arith.constant 1.000000e+00 : f32
    %164 = vector.broadcast %cst_45 : f32 to vector<8x384xf32>
    %165 = arith.addf %164, %163 : vector<8x384xf32>
    %166 = arith.divf %164, %165 : vector<8x384xf32>
    %167 = vector.extract_strided_slice %160 {offsets = [0, 384], sizes = [8, 128], strides = [1, 1]} : vector<8x512xf32> to vector<8x128xf32>
    %168 = math.tanh %167 : vector<8x128xf32>
    %169 = vector.extract_strided_slice %166 {offsets = [0, 0], sizes = [8, 128], strides = [1, 1]} : vector<8x384xf32> to vector<8x128xf32>
    %170 = vector.extract_strided_slice %166 {offsets = [0, 128], sizes = [8, 128], strides = [1, 1]} : vector<8x384xf32> to vector<8x128xf32>
    %171 = vector.extract_strided_slice %166 {offsets = [0, 256], sizes = [8, 128], strides = [1, 1]} : vector<8x384xf32> to vector<8x128xf32>
    %172 = arith.mulf %170, %149 : vector<8x128xf32>
    %173 = arith.mulf %169, %168 : vector<8x128xf32>
    %174 = arith.addf %172, %173 : vector<8x128xf32>
    %175 = math.tanh %174 : vector<8x128xf32>
    %176 = arith.mulf %171, %175 : vector<8x128xf32>
    %177 = arith.index_cast %c6_i32 : i32 to index
    %c0_46 = arith.constant 0 : index
    %c0_47 = arith.constant 0 : index
    %178 = vector.load %arg11[%177, %c0_46, %c0_47] : memref<8x8x128xf32, #tpu.memory_space<vmem>>, vector<1x8x128xf32>
    %179 = vector.shape_cast %178 : vector<1x8x128xf32> to vector<8x128xf32>
    %180 = vector.shape_cast %176 : vector<8x128xf32> to vector<1x8x128xf32>
    tpu.vector_store %arg11[%177, %c0_46, %c0_47], %180 {strides = array<i32>} : memref<8x8x128xf32, #tpu.memory_space<vmem>>, vector<1x8x128xf32>,
    %c7_i32 = arith.constant 7 : i32
    %cst_48 = arith.constant dense<0.000000e+00> : vector<8x512xf32>
    %181 = tpu.matmul %176, %3, %cst_48 {dimension_numbers = #tpu.dot_dimension_numbers<[1], [0], [0], [1], [0, 0, 1, 1], [], []>} : vector<8x128xf32>, vector<128x512xf32>, vector<8x512xf32> -> vector<8x512xf32>
    %182 = arith.index_cast %c7_i32 : i32 to index
    %c0_49 = arith.constant 0 : index
    %c0_50 = arith.constant 0 : index
    %183 = vector.load %arg2[%182, %c0_49, %c0_50] : memref<8x8x512xf32, #tpu.memory_space<vmem>>, vector<1x8x512xf32>
    %184 = vector.shape_cast %183 : vector<1x8x512xf32> to vector<8x512xf32>
    %185 = arith.addf %181, %184 : vector<8x512xf32>
    %186 = vector.extract_strided_slice %185 {offsets = [0, 0], sizes = [8, 384], strides = [1, 1]} : vector<8x512xf32> to vector<8x384xf32>
    %187 = arith.negf %186 : vector<8x384xf32>
    %188 = math.exp %187 : vector<8x384xf32>
    %cst_51 = arith.constant 1.000000e+00 : f32
    %189 = vector.broadcast %cst_51 : f32 to vector<8x384xf32>
    %190 = arith.addf %189, %188 : vector<8x384xf32>
    %191 = arith.divf %189, %190 : vector<8x384xf32>
    %192 = vector.extract_strided_slice %185 {offsets = [0, 384], sizes = [8, 128], strides = [1, 1]} : vector<8x512xf32> to vector<8x128xf32>
    %193 = math.tanh %192 : vector<8x128xf32>
    %194 = vector.extract_strided_slice %191 {offsets = [0, 0], sizes = [8, 128], strides = [1, 1]} : vector<8x384xf32> to vector<8x128xf32>
    %195 = vector.extract_strided_slice %191 {offsets = [0, 128], sizes = [8, 128], strides = [1, 1]} : vector<8x384xf32> to vector<8x128xf32>
    %196 = vector.extract_strided_slice %191 {offsets = [0, 256], sizes = [8, 128], strides = [1, 1]} : vector<8x384xf32> to vector<8x128xf32>
    %197 = arith.mulf %195, %174 : vector<8x128xf32>
    %198 = arith.mulf %194, %193 : vector<8x128xf32>
    %199 = arith.addf %197, %198 : vector<8x128xf32>
    %200 = math.tanh %199 : vector<8x128xf32>
    %201 = arith.mulf %196, %200 : vector<8x128xf32>
    %202 = arith.index_cast %c7_i32 : i32 to index
    %c0_52 = arith.constant 0 : index
    %c0_53 = arith.constant 0 : index
    %203 = vector.load %arg11[%202, %c0_52, %c0_53] : memref<8x8x128xf32, #tpu.memory_space<vmem>>, vector<1x8x128xf32>
    %204 = vector.shape_cast %203 : vector<1x8x128xf32> to vector<8x128xf32>
    %205 = vector.shape_cast %201 : vector<8x128xf32> to vector<1x8x128xf32>
    tpu.vector_store %arg11[%202, %c0_52, %c0_53], %205 {strides = array<i32>} : memref<8x8x128xf32, #tpu.memory_space<vmem>>, vector<1x8x128xf32>,
    %c8_i32 = arith.constant 8 : i32
    %c0_54 = arith.constant 0 : index
    %c0_55 = arith.constant 0 : index
    %206 = vector.load %arg9[%c0_54, %c0_55] : memref<8x128xf32, #tpu.memory_space<vmem>>, vector<8x128xf32>
    tpu.vector_store %arg9[%c0_54, %c0_55], %201 {strides = array<i32>} : memref<8x128xf32, #tpu.memory_space<vmem>>, vector<8x128xf32>,
    %c0_56 = arith.constant 0 : index
    %c0_57 = arith.constant 0 : index
    %207 = vector.load %arg10[%c0_56, %c0_57] : memref<8x128xf32, #tpu.memory_space<vmem>>, vector<8x128xf32>
    tpu.vector_store %arg10[%c0_56, %c0_57], %199 {strides = array<i32>} : memref<8x128xf32, #tpu.memory_space<vmem>>, vector<8x128xf32>,
    %c0_58 = arith.constant 0 : index
    %c0_59 = arith.constant 0 : index
    %c0_60 = arith.constant 0 : index
    %208 = vector.load %arg11[%c0_58, %c0_59, %c0_60] : memref<8x8x128xf32, #tpu.memory_space<vmem>>, vector<1x8x128xf32>
    %209 = vector.shape_cast %208 : vector<1x8x128xf32> to vector<8x128xf32>
    %210 = vector.shape_cast %209 : vector<8x128xf32> to vector<8x1x128xf32>
    %c0_61 = arith.constant 0 : index
    %c0_62 = arith.constant 0 : index
    %c0_63 = arith.constant 0 : index
    %211 = vector.load %arg6[%c0_61, %c0_62, %c0_63] : memref<8x8x128xf32, #tpu.memory_space<vmem>>, vector<8x1x128xf32>
    tpu.vector_store %arg6[%c0_61, %c0_62, %c0_63], %210 {strides = array<i32>} : memref<8x8x128xf32, #tpu.memory_space<vmem>>, vector<8x1x128xf32>,
    %c1 = arith.constant 1 : index
    %c0_64 = arith.constant 0 : index
    %c0_65 = arith.constant 0 : index
    %212 = vector.load %arg11[%c1, %c0_64, %c0_65] : memref<8x8x128xf32, #tpu.memory_space<vmem>>, vector<1x8x128xf32>
    %213 = vector.shape_cast %212 : vector<1x8x128xf32> to vector<8x128xf32>
    %214 = vector.shape_cast %213 : vector<8x128xf32> to vector<8x1x128xf32>
    %c0_66 = arith.constant 0 : index
    %c1_67 = arith.constant 1 : index
    %c0_68 = arith.constant 0 : index
    %215 = vector.load %arg6[%c0_66, %c1_67, %c0_68] : memref<8x8x128xf32, #tpu.memory_space<vmem>>, vector<8x1x128xf32>
    tpu.vector_store %arg6[%c0_66, %c1_67, %c0_68], %214 {strides = array<i32>} : memref<8x8x128xf32, #tpu.memory_space<vmem>>, vector<8x1x128xf32>,
    %c2 = arith.constant 2 : index
    %c0_69 = arith.constant 0 : index
    %c0_70 = arith.constant 0 : index
    %216 = vector.load %arg11[%c2, %c0_69, %c0_70] : memref<8x8x128xf32, #tpu.memory_space<vmem>>, vector<1x8x128xf32>
    %217 = vector.shape_cast %216 : vector<1x8x128xf32> to vector<8x128xf32>
    %218 = vector.shape_cast %217 : vector<8x128xf32> to vector<8x1x128xf32>
    %c0_71 = arith.constant 0 : index
    %c2_72 = arith.constant 2 : index
    %c0_73 = arith.constant 0 : index
    %219 = vector.load %arg6[%c0_71, %c2_72, %c0_73] : memref<8x8x128xf32, #tpu.memory_space<vmem>>, vector<8x1x128xf32>
    tpu.vector_store %arg6[%c0_71, %c2_72, %c0_73], %218 {strides = array<i32>} : memref<8x8x128xf32, #tpu.memory_space<vmem>>, vector<8x1x128xf32>,
    %c3 = arith.constant 3 : index
    %c0_74 = arith.constant 0 : index
    %c0_75 = arith.constant 0 : index
    %220 = vector.load %arg11[%c3, %c0_74, %c0_75] : memref<8x8x128xf32, #tpu.memory_space<vmem>>, vector<1x8x128xf32>
    %221 = vector.shape_cast %220 : vector<1x8x128xf32> to vector<8x128xf32>
    %222 = vector.shape_cast %221 : vector<8x128xf32> to vector<8x1x128xf32>
    %c0_76 = arith.constant 0 : index
    %c3_77 = arith.constant 3 : index
    %c0_78 = arith.constant 0 : index
    %223 = vector.load %arg6[%c0_76, %c3_77, %c0_78] : memref<8x8x128xf32, #tpu.memory_space<vmem>>, vector<8x1x128xf32>
    tpu.vector_store %arg6[%c0_76, %c3_77, %c0_78], %222 {strides = array<i32>} : memref<8x8x128xf32, #tpu.memory_space<vmem>>, vector<8x1x128xf32>,
    %c4 = arith.constant 4 : index
    %c0_79 = arith.constant 0 : index
    %c0_80 = arith.constant 0 : index
    %224 = vector.load %arg11[%c4, %c0_79, %c0_80] : memref<8x8x128xf32, #tpu.memory_space<vmem>>, vector<1x8x128xf32>
    %225 = vector.shape_cast %224 : vector<1x8x128xf32> to vector<8x128xf32>
    %226 = vector.shape_cast %225 : vector<8x128xf32> to vector<8x1x128xf32>
    %c0_81 = arith.constant 0 : index
    %c4_82 = arith.constant 4 : index
    %c0_83 = arith.constant 0 : index
    %227 = vector.load %arg6[%c0_81, %c4_82, %c0_83] : memref<8x8x128xf32, #tpu.memory_space<vmem>>, vector<8x1x128xf32>
    tpu.vector_store %arg6[%c0_81, %c4_82, %c0_83], %226 {strides = array<i32>} : memref<8x8x128xf32, #tpu.memory_space<vmem>>, vector<8x1x128xf32>,
    %c5 = arith.constant 5 : index
    %c0_84 = arith.constant 0 : index
    %c0_85 = arith.constant 0 : index
    %228 = vector.load %arg11[%c5, %c0_84, %c0_85] : memref<8x8x128xf32, #tpu.memory_space<vmem>>, vector<1x8x128xf32>
    %229 = vector.shape_cast %228 : vector<1x8x128xf32> to vector<8x128xf32>
    %230 = vector.shape_cast %229 : vector<8x128xf32> to vector<8x1x128xf32>
    %c0_86 = arith.constant 0 : index
    %c5_87 = arith.constant 5 : index
    %c0_88 = arith.constant 0 : index
    %231 = vector.load %arg6[%c0_86, %c5_87, %c0_88] : memref<8x8x128xf32, #tpu.memory_space<vmem>>, vector<8x1x128xf32>
    tpu.vector_store %arg6[%c0_86, %c5_87, %c0_88], %230 {strides = array<i32>} : memref<8x8x128xf32, #tpu.memory_space<vmem>>, vector<8x1x128xf32>,
    %c6 = arith.constant 6 : index
    %c0_89 = arith.constant 0 : index
    %c0_90 = arith.constant 0 : index
    %232 = vector.load %arg11[%c6, %c0_89, %c0_90] : memref<8x8x128xf32, #tpu.memory_space<vmem>>, vector<1x8x128xf32>
    %233 = vector.shape_cast %232 : vector<1x8x128xf32> to vector<8x128xf32>
    %234 = vector.shape_cast %233 : vector<8x128xf32> to vector<8x1x128xf32>
    %c0_91 = arith.constant 0 : index
    %c6_92 = arith.constant 6 : index
    %c0_93 = arith.constant 0 : index
    %235 = vector.load %arg6[%c0_91, %c6_92, %c0_93] : memref<8x8x128xf32, #tpu.memory_space<vmem>>, vector<8x1x128xf32>
    tpu.vector_store %arg6[%c0_91, %c6_92, %c0_93], %234 {strides = array<i32>} : memref<8x8x128xf32, #tpu.memory_space<vmem>>, vector<8x1x128xf32>,
    %c7 = arith.constant 7 : index
    %c0_94 = arith.constant 0 : index
    %c0_95 = arith.constant 0 : index
    %236 = vector.load %arg11[%c7, %c0_94, %c0_95] : memref<8x8x128xf32, #tpu.memory_space<vmem>>, vector<1x8x128xf32>
    %237 = vector.shape_cast %236 : vector<1x8x128xf32> to vector<8x128xf32>
    %238 = vector.shape_cast %237 : vector<8x128xf32> to vector<8x1x128xf32>
    %c0_96 = arith.constant 0 : index
    %c7_97 = arith.constant 7 : index
    %c0_98 = arith.constant 0 : index
    %239 = vector.load %arg6[%c0_96, %c7_97, %c0_98] : memref<8x8x128xf32, #tpu.memory_space<vmem>>, vector<8x1x128xf32>
    tpu.vector_store %arg6[%c0_96, %c7_97, %c0_98], %238 {strides = array<i32>} : memref<8x8x128xf32, #tpu.memory_space<vmem>>, vector<8x1x128xf32>,
    %c0_i32_99 = arith.constant 0 : i32
    %240 = arith.cmpi eq, %arg1, %c0_i32_99 : i32
    %241 = arith.extui %240 : i1 to i32
    %c0_i32_100 = arith.constant 0 : i32
    %242 = arith.cmpi ne, %241, %c0_i32_100 : i32
    scf.if %242 {
      %c0_101 = arith.constant 0 : index
      %c0_102 = arith.constant 0 : index
      %243 = vector.load %arg9[%c0_101, %c0_102] : memref<8x128xf32, #tpu.memory_space<vmem>>, vector<8x128xf32>
      %c0_103 = arith.constant 0 : index
      %c0_104 = arith.constant 0 : index
      %244 = vector.load %arg7[%c0_103, %c0_104] : memref<8x128xf32, #tpu.memory_space<vmem>>, vector<8x128xf32>
      tpu.vector_store %arg7[%c0_103, %c0_104], %243 {strides = array<i32>} : memref<8x128xf32, #tpu.memory_space<vmem>>, vector<8x128xf32>,
      %c0_105 = arith.constant 0 : index
      %c0_106 = arith.constant 0 : index
      %245 = vector.load %arg10[%c0_105, %c0_106] : memref<8x128xf32, #tpu.memory_space<vmem>>, vector<8x128xf32>
      %c0_107 = arith.constant 0 : index
      %c0_108 = arith.constant 0 : index
      %246 = vector.load %arg8[%c0_107, %c0_108] : memref<8x128xf32, #tpu.memory_space<vmem>>, vector<8x128xf32>
      tpu.vector_store %arg8[%c0_107, %c0_108], %245 {strides = array<i32>} : memref<8x128xf32, #tpu.memory_space<vmem>>, vector<8x128xf32>,
    } else {
    }
    return
  }
  func.func @transform_0(%arg0: i32, %arg1: i32) -> (i32, i32, i32) {
    %c0_i32 = arith.constant 0 : i32
    %c0_i32_0 = arith.constant 0 : i32
    return %arg1, %arg0, %c0_i32 : i32, i32, i32
  }
  func.func @transform_1(%arg0: i32, %arg1: i32) -> (i32, i32) {
    %c0_i32 = arith.constant 0 : i32
    %c0_i32_0 = arith.constant 0 : i32
    %c0_i32_1 = arith.constant 0 : i32
    return %c0_i32, %c0_i32_0 : i32, i32
  }
  func.func @transform_2(%arg0: i32, %arg1: i32) -> (i32, i32) {
    %c0_i32 = arith.constant 0 : i32
    %c0_i32_0 = arith.constant 0 : i32
    return %arg0, %c0_i32 : i32, i32
  }
  func.func @transform_3(%arg0: i32, %arg1: i32) -> (i32, i32) {
    %c0_i32 = arith.constant 0 : i32
    %c0_i32_0 = arith.constant 0 : i32
    return %arg0, %c0_i32 : i32, i32
  }
  func.func @transform_4(%arg0: i32, %arg1: i32) -> (i32, i32, i32) {
    %c0_i32 = arith.constant 0 : i32
    %c0_i32_0 = arith.constant 0 : i32
    return %arg0, %arg1, %c0_i32 : i32, i32, i32
  }
  func.func @transform_5(%arg0: i32, %arg1: i32) -> (i32, i32) {
    %c0_i32 = arith.constant 0 : i32
    %c0_i32_0 = arith.constant 0 : i32
    return %arg0, %c0_i32 : i32, i32
  }
  func.func @transform_6(%arg0: i32, %arg1: i32) -> (i32, i32) {
    %c0_i32 = arith.constant 0 : i32
    %c0_i32_0 = arith.constant 0 : i32
    return %arg0, %c0_i32 : i32, i32
  }
}

</mosaic_0001>

<bundles_post_ra>
// kernel: lstm_forward.1
= control target key start
LH: loop header
LB: loop body
LE: loop exit
PB: predicated region body
PF: predicated region fallthrough
CT: control target
= control target key end

     0   :  { %v2799_v7 = vmov 0.0   ;;  %s3561_s0 = inlined_call_operand.vmem [shape: f32[8,8,512], index: 0, kind: input, shape index: {}]   ;;  %s3562_s1 = inlined_call_operand.vmem [shape: f32[128,512], index: 1, kind: input, shape index: {}]   ;;  %s3563_s2 = inlined_call_operand.vmem [shape: f32[8,128], index: 2, kind: input, shape index: {}]   ;;  %s3564_s3 = inlined_call_operand.vmem [shape: f32[8,128], index: 3, kind: input, shape index: {}]   ;;  %s3565_s4 = inlined_call_operand.hbm [shape: f32[8,8,128], index: 4, kind: output, shape index: {0}]   ;;  %s3566_s5 = inlined_call_operand.vmem [shape: f32[8,128], index: 5, kind: output, shape index: {1}]   ;;  %s3567_s6 = inlined_call_operand.vmem [shape: f32[8,128], index: 6, kind: output, shape index: {2}]  }
   0x1   :  { %v30_v0 = vld [vmem:[%s3562_s1 + $0x8] sm:$0xff]  ;;  %v29_v2 = vld [vmem:[%s3562_s1] sm:$0xff]  ;;  %163 = vmatprep.mubr.f32.mxu0 %v2799_v7  ;;  %234 = vmatprep.mubr.f32.mxu1 %v2799_v7  ;;  %v32_v19 = vld [vmem:[%s3562_s1 + $0x18] sm:$0xff] }
   0x2   :  { %v34_v1 = vld [vmem:[%s3562_s1 + $0x28] sm:$0xff]  ;;  %v33_v4 = vld [vmem:[%s3562_s1 + $0x20] sm:$0xff]  ;;  %v36_v20 = vld [vmem:[%s3562_s1 + $0x38] sm:$0xff] }
   0x3   :  { %v2848_v3 = vpack.c.bf16 %v34_v1, %v30_v0  ;;  %v38_v5 = vld [vmem:[%s3562_s1 + $0x48] sm:$0xff]  ;;  %v2861_v8 = vpack.c.bf16 %v33_v4, %v29_v2  ;;  %v37_v10 = vld [vmem:[%s3562_s1 + $0x40] sm:$0xff]  ;;  %v2902_v22 = vpack.c.bf16 %v36_v20, %v32_v19  ;;  %v31_v23 = vld [vmem:[%s3562_s1 + $0x10] sm:$0xff] }
   0x4   :  { %v42_v6 = vld [vmem:[%s3562_s1 + $0x68] sm:$0xff]  ;;  %v41_v11 = vld [vmem:[%s3562_s1 + $0x60] sm:$0xff]  ;;  %v35_v24 = vld [vmem:[%s3562_s1 + $0x30] sm:$0xff] }
   0x5   :  { %v2863_v9 = vpack.c.bf16 %v42_v6, %v38_v5  ;;  %v46_v12 = vld [vmem:[%s3562_s1 + $0x88] sm:$0xff]  ;;  %2131 = vmatprep.subr.bf16.mxu0 %v2848_v3  ;;  %v2879_v14 = vpack.c.bf16 %v41_v11, %v37_v10  ;;  %v45_v15 = vld [vmem:[%s3562_s1 + $0x80] sm:$0xff]  ;;  %v2910_v25 = vpack.c.bf16 %v35_v24, %v31_v23  ;;  %2163 = vmatprep.subr.bf16.mxu1 %v2902_v22  ;;  %v40_v27 = vld [vmem:[%s3562_s1 + $0x58] sm:$0xff] }
   0x6   :  { %v50_v13 = vld [vmem:[%s3562_s1 + $0xa8] sm:$0xff]  ;;  %2133 = vmatpush1.bf16.msra.mxu0 %v2861_v8  ;;  %v49_v16 = vld [vmem:[%s3562_s1 + $0xa0] sm:$0xff]  ;;  %v44_v28 = vld [vmem:[%s3562_s1 + $0x78] sm:$0xff] }
   0x7   :  { %2135 = vmatprep.subr.bf16.mxu0 %v2863_v9  ;;  %v2888_v17 = vpack.c.bf16 %v50_v13, %v46_v12  ;;  %v54_v18 = vld [vmem:[%s3562_s1 + $0xc8] sm:$0xff]  ;;  %v2913_v26 = vpack.c.bf16 %v49_v16, %v45_v15  ;;  %v39_v29 = vld [vmem:[%s3562_s1 + $0x50] sm:$0xff]  ;;  %v53_v31 = vld [vmem:[%s3562_s1 + $0xc0] sm:$0xff]  ;;  %2165 = vmatpush1.bf16.msra.mxu1 %v2910_v25  ;;  %v2935_v33 = vpack.c.bf16 %v44_v28, %v40_v27 }
   0x8   :  { %v58_v21 = vld [vmem:[%s3562_s1 + $0xe8] sm:$0xff]  ;;  %v57_v32 = vld [vmem:[%s3562_s1 + $0xe0] sm:$0xff]  ;;  %v43_v34 = vld [vmem:[%s3562_s1 + $0x70] sm:$0xff] }
   0x9   :  { %v2926_v30 = vpack.c.bf16 %v58_v21, %v54_v18  ;;  %v62_v35 = vld [vmem:[%s3562_s1 + $0x108] sm:$0xff]  ;;  %v2946_v37 = vpack.c.bf16 %v43_v34, %v39_v29  ;;  %v48_v38 = vld [vmem:[%s3562_s1 + $0x98] sm:$0xff]  ;;  %2167 = vmatprep.subr.bf16.mxu1 %v2935_v33  ;;  %v47_v40 = vld [vmem:[%s3562_s1 + $0x90] sm:$0xff]  ;;  %v2962_v42 = vpack.c.bf16 %v57_v32, %v53_v31 }
   0xa   :  { %2137 = vmatpush1.bf16.msra.mxu0 %v2879_v14  ;;  %v66_v36 = vld [vmem:[%s3562_s1 + $0x128] sm:$0xff]  ;;  %v52_v39 = vld [vmem:[%s3562_s1 + $0xb8] sm:$0xff]  ;;  %v51_v41 = vld [vmem:[%s3562_s1 + $0xb0] sm:$0xff] }
   0xb   :  { %2139 = vmatprep.subr.bf16.mxu0 %v2888_v17  ;;  %v61_v43 = vld [vmem:[%s3562_s1 + $0x100] sm:$0xff]  ;;  %v2970_v45 = vpack.c.bf16 %v52_v39, %v48_v38  ;;  %v2973_v46 = vpack.c.bf16 %v66_v36, %v62_v35  ;;  %2169 = vmatpush1.bf16.msra.mxu1 %v2946_v37  ;;  %v70_v47 = vld [vmem:[%s3562_s1 + $0x148] sm:$0xff]  ;;  %v2979_v48 = vpack.c.bf16 %v51_v41, %v47_v40  ;;  %v56_v49 = vld [vmem:[%s3562_s1 + $0xd8] sm:$0xff] }
   0xc   :  { %v65_v44 = vld [vmem:[%s3562_s1 + $0x120] sm:$0xff]  ;;  %v60_v50 = vld [vmem:[%s3562_s1 + $0xf8] sm:$0xff]  ;;  %v74_v51 = vld [vmem:[%s3562_s1 + $0x168] sm:$0xff] }
   0xd   :  { %2171 = vmatprep.subr.bf16.mxu1 %v2970_v45  ;;  %v2991_v52 = vpack.c.bf16 %v60_v50, %v56_v49  ;;  %v55_v53 = vld [vmem:[%s3562_s1 + $0xd0] sm:$0xff]  ;;  %v3000_v55 = vpack.c.bf16 %v65_v44, %v61_v43  ;;  %v64_v56 = vld [vmem:[%s3562_s1 + $0x118] sm:$0xff]  ;;  %v3009_v58 = vpack.c.bf16 %v74_v51, %v70_v47  ;;  %v69_v59 = vld [vmem:[%s3562_s1 + $0x140] sm:$0xff] }
   0xe   :  { %2141 = vmatpush1.bf16.msra.mxu0 %v2913_v26  ;;  %v59_v54 = vld [vmem:[%s3562_s1 + $0xf0] sm:$0xff]  ;;  %v68_v57 = vld [vmem:[%s3562_s1 + $0x138] sm:$0xff]  ;;  %v73_v60 = vld [vmem:[%s3562_s1 + $0x160] sm:$0xff] }
   0xf   :  { %2143 = vmatprep.subr.bf16.mxu0 %v2926_v30  ;;  %2173 = vmatpush1.bf16.msra.mxu1 %v2979_v48  ;;  %v78_v61 = vld [vmem:[%s3562_s1 + $0x188] sm:$0xff]  ;;  %v3021_v62 = vpack.c.bf16 %v59_v54, %v55_v53  ;;  %v3027_v0 = vpack.c.bf16 %v68_v57, %v64_v56  ;;  %v63_v1 = vld [vmem:[%s3562_s1 + $0x110] sm:$0xff]  ;;  %v72_v4 = vld [vmem:[%s3562_s1 + $0x158] sm:$0xff]  ;;  %v3042_v6 = vpack.c.bf16 %v73_v60, %v69_v59 }
  0x10   :  { %v82_v63 = vld [vmem:[%s3562_s1 + $0x1a8] sm:$0xff]  ;;  %2175 = vmatprep.subr.bf16.mxu1 %v2991_v52  ;;  %v67_v2 = vld [vmem:[%s3562_s1 + $0x130] sm:$0xff]  ;;  %v76_v5 = vld [vmem:[%s3562_s1 + $0x178] sm:$0xff] }
  0x11   :  { %v77_v10 = vld [vmem:[%s3562_s1 + $0x180] sm:$0xff]  ;;  %v3048_v11 = vpack.c.bf16 %v82_v63, %v78_v61  ;;  %v86_v13 = vld [vmem:[%s3562_s1 + $0x1c8] sm:$0xff]  ;;  %v3060_v16 = vpack.c.bf16 %v67_v2, %v63_v1  ;;  %v3063_v18 = vpack.c.bf16 %v76_v5, %v72_v4  ;;  %v71_v19 = vld [vmem:[%s3562_s1 + $0x150] sm:$0xff] }
  0x12   :  { %2145 = vmatpush1.bf16.msra.mxu0 %v2962_v42  ;;  %v81_v12 = vld [vmem:[%s3562_s1 + $0x1a0] sm:$0xff]  ;;  %v90_v15 = vld [vmem:[%s3562_s1 + $0x1e8] sm:$0xff]  ;;  %v75_v20 = vld [vmem:[%s3562_s1 + $0x170] sm:$0xff] }
  0x13   :  { %2147 = vmatprep.subr.bf16.mxu0 %v2973_v46  ;;  %2177 = vmatpush1.bf16.msra.mxu1 %v3021_v62 }
  0x14   :  { %2179 = vmatprep.subr.bf16.mxu1 %v3027_v0 }
  0x16   :  { %2149 = vmatpush1.bf16.msra.mxu0 %v3000_v55 }
  0x17   :  { %2151 = vmatprep.subr.bf16.mxu0 %v3009_v58 }
  0x18   :  { %12 = vsyncpa [#allocation6], 0  ;;  %v80_v21 = vld [vmem:[%s3562_s1 + $0x198] sm:$0xff]  ;;  %v3078_v24 = vpack.c.bf16 %v81_v12, %v77_v10  ;;  %v3081_v27 = vpack.c.bf16 %v90_v15, %v86_v13  ;;  %v85_v28 = vld [vmem:[%s3562_s1 + $0x1c0] sm:$0xff]  ;;  %2181 = vmatpush1.bf16.msra.mxu1 %v3060_v16  ;;  %v3090_v31 = vpack.c.bf16 %v75_v20, %v71_v19 }
  0x19   :  { %v84_v23 = vld [vmem:[%s3562_s1 + $0x1b8] sm:$0xff]  ;;  %v89_v29 = vld [vmem:[%s3562_s1 + $0x1e0] sm:$0xff]  ;;  %2183 = vmatprep.subr.bf16.mxu1 %v3063_v18  ;;  %v79_v34 = vld [vmem:[%s3562_s1 + $0x190] sm:$0xff] }
  0x1a   :  { %2153 = vmatpush1.bf16.msra.mxu0 %v3042_v6  ;;  %v3093_v32 = vpack.c.bf16 %v84_v23, %v80_v21  ;;  %v83_v35 = vld [vmem:[%s3562_s1 + $0x1b0] sm:$0xff]  ;;  %v88_v36 = vld [vmem:[%s3562_s1 + $0x1d8] sm:$0xff]  ;;  %v3108_v39 = vpack.c.bf16 %v89_v29, %v85_v28  ;;  %v25_v47 = vld [vmem:[%s3563_s2] sm:$0xff] }
  0x1b   :  { %2155 = vmatprep.subr.bf16.mxu0 %v3048_v11  ;;  %v92_v38 = vld [vmem:[%s3562_s1 + $0x1f8] sm:$0xff]  ;;  %v3112_v40 = vpack.c.bf16 %v83_v35, %v79_v34  ;;  %v87_v43 = vld [vmem:[%s3562_s1 + $0x1d0] sm:$0xff]  ;;  %v95_v50 = vld [vmem:[%s3561_s0] sm:$0xff] }
  0x1c   :  { %2185 = vmatpush1.bf16.msra.mxu1 %v3090_v31  ;;  %v3115_v41 = vpack.c.bf16 %v92_v38, %v88_v36  ;;  %v91_v44 = vld [vmem:[%s3562_s1 + $0x1f0] sm:$0xff]  ;;  %v96_v51 = vld [vmem:[%s3561_s0 + $0x8] sm:$0xff]  ;;  %v98_v4 = vld [vmem:[%s3561_s0 + $0x18] sm:$0xff] }
  0x1d   :  { %2187 = vmatprep.subr.bf16.mxu1 %v3093_v32  ;;  %v3128_v49 = vpack.c.bf16 %v91_v44, %v87_v43  ;;  %v97_v61 = vld [vmem:[%s3561_s0 + $0x10] sm:$0xff]  ;;  %v27_v23 = vld [vmem:[%s3564_s3] sm:$0xff]  ;;  %v2800_v43 = vmov 1966171168  }
  0x1e   :  { %2157 = vmatpush1.bf16.msra.mxu0 %v3078_v24  ;;  %v1483_v44 = vunpack.c.l.s4 %v2800_v43 }
  0x1f   :  { %2159 = vmatprep.subr.bf16.mxu0 %v3081_v27 }
  0x20   :  { %2189 = vmatpush1.bf16.msra.mxu1 %v3112_v40 }
  0x21   :  { %2191 = vmatprep.subr.bf16.mxu1 %v3115_v41 }
  0x22   :  { %2161 = vmatpush1.bf16.msra.mxu0 %v3108_v39 }
  0x23   :  { %2195 = vmatprep.subr.bf16.mxu0 %v2848_v3 }
  0x24   :  { %2193 = vmatpush1.bf16.msra.mxu1 %v3128_v49 }
  0x25   :  { %164 = vmatmul.mubr.f32.vlgmr.msra.gmra.mrb[0].mxu0 %v25_v47  ;;  %2227 = vmatprep.subr.bf16.mxu1 %v2902_v22 }
  0x26   :  { %2197 = vmatpush1.bf16.msra.mxu0 %v2861_v8  ;;  %335 = vmatprep.mubr.f32.mxu0 %v2799_v7 }
  0x27   :  { %2199 = vmatprep.subr.bf16.mxu0 %v2863_v9  ;;  %235 = vmatmul.mubr.f32.vlgmr.msra.gmra.mrb[0].mxu1 %v25_v47  ;;  %v1485_v47 = vlaneseq }
  0x28   :  { %2229 = vmatpush1.bf16.msra.mxu1 %v2910_v25  ;;  %406 = vmatprep.mubr.f32.mxu1 %v2799_v7 }
  0x29   :  { %2231 = vmatprep.subr.bf16.mxu1 %v2935_v33 }
  0x2a   :  { %2201 = vmatpush1.bf16.msra.mxu0 %v2879_v14 }
  0x2b   :  { %2203 = vmatprep.subr.bf16.mxu0 %v2888_v17 }
  0x2c   :  { %2233 = vmatpush1.bf16.msra.mxu1 %v2946_v37 }
  0x2d   :  { %2235 = vmatprep.subr.bf16.mxu1 %v2970_v45 }
  0x2e   :  { %2205 = vmatpush1.bf16.msra.mxu0 %v2913_v26 }
  0x2f   :  { %2207 = vmatprep.subr.bf16.mxu0 %v2926_v30 }
  0x30   :  { %2237 = vmatpush1.bf16.msra.mxu1 %v2979_v48 }
  0x31   :  { %2239 = vmatprep.subr.bf16.mxu1 %v2991_v52 }
  0x32   :  { %2209 = vmatpush1.bf16.msra.mxu0 %v2962_v42 }
  0x33   :  { %2211 = vmatprep.subr.bf16.mxu0 %v2973_v46 }
  0x34   :  { %2241 = vmatpush1.bf16.msra.mxu1 %v3021_v62 }
  0x35   :  { %2243 = vmatprep.subr.bf16.mxu1 %v3027_v0 }
  0x36   :  { %2213 = vmatpush1.bf16.msra.mxu0 %v3000_v55 }
  0x37   :  { %2215 = vmatprep.subr.bf16.mxu0 %v3009_v58 }
  0x38   :  { %2245 = vmatpush1.bf16.msra.mxu1 %v3060_v16 }
  0x39   :  { %2247 = vmatprep.subr.bf16.mxu1 %v3063_v18 }
  0x3a   :  { %2217 = vmatpush1.bf16.msra.mxu0 %v3042_v6 }
  0x3b   :  { %2219 = vmatprep.subr.bf16.mxu0 %v3048_v11 }
  0x3c   :  { %2249 = vmatpush1.bf16.msra.mxu1 %v3090_v31 }
  0x3d   :  { %2251 = vmatprep.subr.bf16.mxu1 %v3093_v32 }
  0x3e   :  { %2221 = vmatpush1.bf16.msra.mxu0 %v3078_v24 }
  0x3f   :  { %2223 = vmatprep.subr.bf16.mxu0 %v3081_v27 }
  0x40   :  { %2253 = vmatpush1.bf16.msra.mxu1 %v3112_v40 }
  0x41   :  { %2255 = vmatprep.subr.bf16.mxu1 %v3115_v41 }
  0x42   :  { %2225 = vmatpush1.bf16.msra.mxu0 %v3108_v39 }
  0x43   :  { %2259 = vmatprep.subr.bf16.mxu0 %v2848_v3 }
  0x44   :  { %2257 = vmatpush1.bf16.msra.mxu1 %v3128_v49 }
  0x45   :  { %2291 = vmatprep.subr.bf16.mxu1 %v2902_v22 }
  0xf8   :  { %v165_v53 = vpop.f32.mrb[0].mxu0 }
  0xf9   :  { %v166_v54 = vadd.f32 %v165_v53, %v95_v50  ;;  %v167_v56 = vpop.f32.mrb[1].mxu0  ;;  %v1484_v50 = vunpack.c.0.s8 %v1483_v44 }
  0xfa   :  { %v168_v57 = vadd.f32 %v167_v56, %v96_v51  ;;  %v236_v63 = vpop.f32.mrb[0].mxu1  ;;  %v1486_v51 = vshrl.u32 %v1485_v47, 7  ;;  %v2051_v47 = vld [vmem:[%s3561_s0 + $0x30] sm:$0xff] }
  0xfb   :  { %v2046_v59 = vmul.f32 -1.442695, %v166_v54  ;;  %v238_v1 = vpop.f32.mrb[1].mxu1  ;;  %v237_v2 = vadd.f32 %v236_v63, %v97_v61 }
  0xfc   :  { %v2047_v60 = vmul.f32 -1.442695, %v168_v57  ;;  %v239_v10 = vadd.f32 %v238_v1, %v98_v4  ;;  %v3186_v54 = vsub.s32 %v1484_v50, %v1486_v51  ;;  %v2052_v51 = vld [vmem:[%s3561_s0 + $0x38] sm:$0xff] }
  0xfd   :  { %2647 = vpow2.f32 %v2046_v59  ;;  %v2048_v5 = vmul.f32 -1.442695, %v237_v2 }
  0xfe   :  { %2649 = vpow2.f32 %v2047_v60 }
  0xff   :  { %2651 = vpow2.f32 %v2048_v5 }
 0x100   :  { %2653 = vtanh.f32 %v239_v10 }
 0x107   :  { %v2648_v12 = vpop.eup %2647 }
 0x108   :  { %v2650_v13 = vpop.eup %2649  ;;  %v250_v15 = vadd.f32 1.0, %v2648_v12 }
 0x109   :  { %v251_v19 = vadd.f32 1.0, %v2650_v13  ;;  %v2652_v20 = vpop.eup %2651 }
 0x10a   :  { %2655 = vrcp.f32 %v250_v15  ;;  %v2654_v21 = vpop.eup %2653  ;;  %v252_v29 = vadd.f32 1.0, %v2652_v20  ;;  %v2049_v20 = vld [vmem:[%s3561_s0 + $0x20] sm:$0xff] }
 0x10b   :  { %2657 = vrcp.f32 %v251_v19 }
 0x10c   :  { %2659 = vrcp.f32 %v252_v29 }
 0x114   :  { %v2656_v28 = vpop.eup %2655 }
 0x115   :  { %v2658_v34 = vpop.eup %2657  ;;  %v261_v35 = vmul.f32 %v2656_v28, %v2654_v21  ;;  %v2050_v21 = vld [vmem:[%s3561_s0 + $0x28] sm:$0xff] }
 0x116   :  { %v260_v36 = vmul.f32 %v2658_v34, %v27_v23  ;;  %v2660_v53 = vpop.eup %2659 }
 0x118   :  { %v3183_v38 = vadd.f32 %v261_v35, %v260_v36 }
 0x11a   :  { %2661 = vtanh.f32 %v3183_v38 }
 0x124   :  { %v2662_v56 = vpop.eup %2661 }
 0x125   :  { %v264_v57 = vmul.f32 %v2662_v56, %v2660_v53 }
 0x127   :  { %336 = vmatmul.mubr.f32.vlgmr.msra.gmra.mrb[2].mxu0 %v264_v57  ;;  %v1481_v59 = vcombine.high %v264_v57, %v264_v57  ;;  %v1488_v60 = vrot.slane %v264_v57, %v3186_v54  ;;  %407 = vmatmul.mubr.f32.vlgmr.msra.gmra.mrb[2].mxu1 %v264_v57 }
 0x128   :  { %2261 = vmatpush1.bf16.msra.mxu0 %v2861_v8  ;;  %2293 = vmatpush1.bf16.msra.mxu1 %v2910_v25 }
 0x129   :  { %v1495_v61 = vrot.slane %v1481_v59, %v3186_v54  ;;  %v1496_v63 = vcombine.high %v1488_v60, %v1488_v60  ;;  %v1504_v1 = vrot.slane %v1488_v60, %v3186_v54  ;;  %2098 = vst.sshfl [vmem:[#allocation5] sm:$0x1 pattern:$0x73625140] %v1488_v60  ;;  %2263 = vmatprep.subr.bf16.mxu0 %v2863_v9 }
 0x12a   :  { %2295 = vmatprep.subr.bf16.mxu1 %v2935_v33  ;;  %508 = vmatprep.mubr.f32.mxu0 %v2799_v7 }
 0x12b   :  { %579 = vmatprep.mubr.f32.mxu1 %v2799_v7  ;;  %v1497_v2 = vcombine.high %v1495_v61, %v1495_v61  ;;  %v1511_v4 = vrot.slane %v1495_v61, %v3186_v54  ;;  %v1518_v5 = vrot.slane %v1496_v63, %v3186_v54  ;;  %v1526_v10 = vcombine.high %v1504_v1, %v1504_v1 }
 0x12c   :  { %2099 = vst.sshfl [vmem:[#allocation5 + $0x8] sm:$0x1 pattern:$0x73625140] %v1496_v63  ;;  %2265 = vmatpush1.bf16.msra.mxu0 %v2879_v14  ;;  %2297 = vmatpush1.bf16.msra.mxu1 %v2946_v37 }
 0x12d   :  { %2100 = vst.sshfl [vmem:[#allocation5 + $0x20] sm:$0x1 pattern:$0x73625140] %v1495_v61  ;;  %v1525_v12 = vrot.slane %v1497_v2, %v3186_v54  ;;  %v1527_v13 = vcombine.high %v1511_v4, %v1511_v4  ;;  %v1528_v15 = vcombine.high %v1518_v5, %v1518_v5  ;;  %1540 = vst [vmem:[#allocation5 + $0x10] sm:$0x1] %v1526_v10  ;;  %2267 = vmatprep.subr.bf16.mxu0 %v2888_v17 }
 0x12e   :  { %2101 = vst.sshfl [vmem:[#allocation5 + $0x28] sm:$0x1 pattern:$0x73625140] %v1497_v2  ;;  %2299 = vmatprep.subr.bf16.mxu1 %v2970_v45 }
 0x12f   :  { %v1529_v19 = vcombine.high %v1525_v12, %v1525_v12  ;;  %1541 = vst [vmem:[#allocation5 + $0x18] sm:$0x1] %v1528_v15  ;;  %1544 = vst [vmem:[#allocation5 + $0x30] sm:$0x1] %v1527_v13 }
 0x130   :  { %2269 = vmatpush1.bf16.msra.mxu0 %v2913_v26  ;;  %2301 = vmatpush1.bf16.msra.mxu1 %v2979_v48 }
 0x131   :  { %1545 = vst [vmem:[#allocation5 + $0x38] sm:$0x1] %v1529_v19  ;;  %2271 = vmatprep.subr.bf16.mxu0 %v2926_v30  ;;  %2303 = vmatprep.subr.bf16.mxu1 %v2991_v52 }
 0x134   :  { %2273 = vmatpush1.bf16.msra.mxu0 %v2962_v42  ;;  %2305 = vmatpush1.bf16.msra.mxu1 %v3021_v62 }
 0x135   :  { %2275 = vmatprep.subr.bf16.mxu0 %v2973_v46  ;;  %2307 = vmatprep.subr.bf16.mxu1 %v3027_v0 }
 0x138   :  { %2277 = vmatpush1.bf16.msra.mxu0 %v3000_v55  ;;  %2309 = vmatpush1.bf16.msra.mxu1 %v3060_v16 }
 0x139   :  { %2279 = vmatprep.subr.bf16.mxu0 %v3009_v58  ;;  %2311 = vmatprep.subr.bf16.mxu1 %v3063_v18 }
 0x13c   :  { %2281 = vmatpush1.bf16.msra.mxu0 %v3042_v6  ;;  %2313 = vmatpush1.bf16.msra.mxu1 %v3090_v31 }
 0x13d   :  { %2283 = vmatprep.subr.bf16.mxu0 %v3048_v11  ;;  %2315 = vmatprep.subr.bf16.mxu1 %v3093_v32 }
 0x140   :  { %2285 = vmatpush1.bf16.msra.mxu0 %v3078_v24  ;;  %2317 = vmatpush1.bf16.msra.mxu1 %v3112_v40 }
 0x141   :  { %2287 = vmatprep.subr.bf16.mxu0 %v3081_v27  ;;  %2319 = vmatprep.subr.bf16.mxu1 %v3115_v41 }
 0x144   :  { %2289 = vmatpush1.bf16.msra.mxu0 %v3108_v39  ;;  %2321 = vmatpush1.bf16.msra.mxu1 %v3128_v49 }
 0x145   :  { %2323 = vmatprep.subr.bf16.mxu0 %v2848_v3  ;;  %2355 = vmatprep.subr.bf16.mxu1 %v2902_v22 }
 0x1fa   :  { %v337_v23 = vpop.f32.mrb[2].mxu0  ;;  %v408_v28 = vpop.f32.mrb[2].mxu1 }
 0x1fb   :  { %v338_v29 = vadd.f32 %v2049_v20, %v337_v23  ;;  %v339_v34 = vpop.f32.mrb[3].mxu0  ;;  %v410_v35 = vpop.f32.mrb[3].mxu1  ;;  %v409_v50 = vadd.f32 %v2051_v47, %v408_v28 }
 0x1fc   :  { %v340_v36 = vadd.f32 %v2050_v21, %v339_v34  ;;  %v411_v53 = vadd.f32 %v2052_v51, %v410_v35 }
 0x1fd   :  { %v2053_v43 = vmul.f32 -1.442695, %v338_v29  ;;  %v2055_v56 = vmul.f32 -1.442695, %v409_v50 }
 0x1fe   :  { %v2054_v44 = vmul.f32 -1.442695, %v340_v36 }
 0x1ff   :  { %2663 = vpow2.f32 %v2053_v43 }
 0x200   :  { %2665 = vpow2.f32 %v2054_v44 }
 0x201   :  { %2667 = vtanh.f32 %v411_v53  ;;  %v2056_v53 = vld [vmem:[%s3561_s0 + $0x40] sm:$0xff] }
 0x202   :  { %2669 = vpow2.f32 %v2055_v56  ;;  %v2057_v56 = vld [vmem:[%s3561_s0 + $0x48] sm:$0xff] }
 0x209   :  { %v2664_v57 = vpop.eup %2663 }
 0x20a   :  { %v422_v59 = vadd.f32 1.0, %v2664_v57  ;;  %v2666_v60 = vpop.eup %2665 }
 0x20b   :  { %v423_v61 = vadd.f32 1.0, %v2666_v60  ;;  %v2668_v63 = vpop.eup %2667 }
 0x20c   :  { %2671 = vrcp.f32 %v422_v59  ;;  %v2670_v1 = vpop.eup %2669 }
 0x20d   :  { %2673 = vrcp.f32 %v423_v61  ;;  %v424_v10 = vadd.f32 1.0, %v2670_v1 }
 0x20f   :  { %2675 = vrcp.f32 %v424_v10 }
 0x216   :  { %v2672_v2 = vpop.eup %2671 }
 0x217   :  { %v433_v4 = vmul.f32 %v2672_v2, %v2668_v63  ;;  %v2674_v5 = vpop.eup %2673 }
 0x218   :  { %v432_v12 = vmul.f32 %v2674_v5, %v3183_v38  ;;  %v2058_v5 = vld [vmem:[%s3561_s0 + $0x50] sm:$0xff] }
 0x219   :  { %v2676_v15 = vpop.eup %2675 }
 0x21a   :  { %v3241_v13 = vadd.f32 %v433_v4, %v432_v12  ;;  %v2059_v12 = vld [vmem:[%s3561_s0 + $0x58] sm:$0xff] }
 0x21c   :  { %2677 = vtanh.f32 %v3241_v13 }
 0x226   :  { %v2678_v19 = vpop.eup %2677 }
 0x227   :  { %v436_v20 = vmul.f32 %v2678_v19, %v2676_v15 }
 0x229   :  { %509 = vmatmul.mubr.f32.vlgmr.msra.gmra.mrb[4].mxu0 %v436_v20  ;;  %v1548_v21 = vcombine.high %v436_v20, %v436_v20  ;;  %v1555_v23 = vrot.slane %v436_v20, %v3186_v54  ;;  %580 = vmatmul.mubr.f32.vlgmr.msra.gmra.mrb[4].mxu1 %v436_v20 }
 0x22a   :  { %2325 = vmatpush1.bf16.msra.mxu0 %v2861_v8  ;;  %2357 = vmatpush1.bf16.msra.mxu1 %v2910_v25 }
 0x22b   :  { %v1562_v28 = vrot.slane %v1548_v21, %v3186_v54  ;;  %v1563_v38 = vcombine.high %v1555_v23, %v1555_v23  ;;  %v1571_v29 = vrot.slane %v1555_v23, %v3186_v54  ;;  %2102 = vst.sshfl [vmem:[#allocation5 + $0x1] sm:$0x1 pattern:$0x73625140] %v1555_v23  ;;  %2327 = vmatprep.subr.bf16.mxu0 %v2863_v9 }
 0x22c   :  { %2359 = vmatprep.subr.bf16.mxu1 %v2935_v33  ;;  %681 = vmatprep.mubr.f32.mxu0 %v2799_v7 }
 0x22d   :  { %752 = vmatprep.mubr.f32.mxu1 %v2799_v7  ;;  %v1564_v34 = vcombine.high %v1562_v28, %v1562_v28  ;;  %v1578_v35 = vrot.slane %v1562_v28, %v3186_v54  ;;  %v1585_v36 = vrot.slane %v1563_v38, %v3186_v54  ;;  %v1593_v43 = vcombine.high %v1571_v29, %v1571_v29 }
 0x22e   :  { %2103 = vst.sshfl [vmem:[#allocation5 + $0x9] sm:$0x1 pattern:$0x73625140] %v1563_v38  ;;  %2329 = vmatpush1.bf16.msra.mxu0 %v2879_v14  ;;  %2361 = vmatpush1.bf16.msra.mxu1 %v2946_v37 }
 0x22f   :  { %2104 = vst.sshfl [vmem:[#allocation5 + $0x21] sm:$0x1 pattern:$0x73625140] %v1562_v28  ;;  %v1592_v44 = vrot.slane %v1564_v34, %v3186_v54  ;;  %v1594_v47 = vcombine.high %v1578_v35, %v1578_v35  ;;  %v1595_v50 = vcombine.high %v1585_v36, %v1585_v36  ;;  %1607 = vst [vmem:[#allocation5 + $0x11] sm:$0x1] %v1593_v43  ;;  %2331 = vmatprep.subr.bf16.mxu0 %v2888_v17 }
 0x230   :  { %2105 = vst.sshfl [vmem:[#allocation5 + $0x29] sm:$0x1 pattern:$0x73625140] %v1564_v34  ;;  %2363 = vmatprep.subr.bf16.mxu1 %v2970_v45 }
 0x231   :  { %v1596_v51 = vcombine.high %v1592_v44, %v1592_v44  ;;  %1608 = vst [vmem:[#allocation5 + $0x19] sm:$0x1] %v1595_v50  ;;  %1611 = vst [vmem:[#allocation5 + $0x31] sm:$0x1] %v1594_v47 }
 0x232   :  { %2333 = vmatpush1.bf16.msra.mxu0 %v2913_v26  ;;  %2365 = vmatpush1.bf16.msra.mxu1 %v2979_v48 }
 0x233   :  { %1612 = vst [vmem:[#allocation5 + $0x39] sm:$0x1] %v1596_v51  ;;  %2335 = vmatprep.subr.bf16.mxu0 %v2926_v30  ;;  %2367 = vmatprep.subr.bf16.mxu1 %v2991_v52 }
 0x236   :  { %2337 = vmatpush1.bf16.msra.mxu0 %v2962_v42  ;;  %2369 = vmatpush1.bf16.msra.mxu1 %v3021_v62 }
 0x237   :  { %2339 = vmatprep.subr.bf16.mxu0 %v2973_v46  ;;  %2371 = vmatprep.subr.bf16.mxu1 %v3027_v0 }
 0x23a   :  { %2341 = vmatpush1.bf16.msra.mxu0 %v3000_v55  ;;  %2373 = vmatpush1.bf16.msra.mxu1 %v3060_v16 }
 0x23b   :  { %2343 = vmatprep.subr.bf16.mxu0 %v3009_v58  ;;  %2375 = vmatprep.subr.bf16.mxu1 %v3063_v18 }
 0x23e   :  { %2345 = vmatpush1.bf16.msra.mxu0 %v3042_v6  ;;  %2377 = vmatpush1.bf16.msra.mxu1 %v3090_v31 }
 0x23f   :  { %2347 = vmatprep.subr.bf16.mxu0 %v3048_v11  ;;  %2379 = vmatprep.subr.bf16.mxu1 %v3093_v32 }
 0x242   :  { %2349 = vmatpush1.bf16.msra.mxu0 %v3078_v24  ;;  %2381 = vmatpush1.bf16.msra.mxu1 %v3112_v40 }
 0x243   :  { %2351 = vmatprep.subr.bf16.mxu0 %v3081_v27  ;;  %2383 = vmatprep.subr.bf16.mxu1 %v3115_v41 }
 0x246   :  { %2353 = vmatpush1.bf16.msra.mxu0 %v3108_v39  ;;  %2385 = vmatpush1.bf16.msra.mxu1 %v3128_v49 }
 0x247   :  { %2387 = vmatprep.subr.bf16.mxu0 %v2848_v3  ;;  %2419 = vmatprep.subr.bf16.mxu1 %v2902_v22 }
 0x2fc   :  { %v510_v57 = vpop.f32.mrb[4].mxu0  ;;  %v581_v59 = vpop.f32.mrb[4].mxu1 }
 0x2fd   :  { %v511_v60 = vadd.f32 %v2056_v53, %v510_v57  ;;  %v512_v61 = vpop.f32.mrb[5].mxu0  ;;  %v583_v63 = vpop.f32.mrb[5].mxu1  ;;  %v582_v10 = vadd.f32 %v2058_v5, %v581_v59 }
 0x2fe   :  { %v513_v1 = vadd.f32 %v2057_v56, %v512_v61  ;;  %v584_v15 = vadd.f32 %v2059_v12, %v583_v63 }
 0x2ff   :  { %v2060_v2 = vmul.f32 -1.442695, %v511_v60  ;;  %v2062_v19 = vmul.f32 -1.442695, %v582_v10 }
 0x300   :  { %v2061_v4 = vmul.f32 -1.442695, %v513_v1 }
 0x301   :  { %2679 = vpow2.f32 %v2060_v2 }
 0x302   :  { %2681 = vpow2.f32 %v2061_v4 }
 0x303   :  { %2683 = vtanh.f32 %v584_v15  ;;  %v2063_v15 = vld [vmem:[%s3561_s0 + $0x60] sm:$0xff] }
 0x304   :  { %2685 = vpow2.f32 %v2062_v19  ;;  %v2064_v19 = vld [vmem:[%s3561_s0 + $0x68] sm:$0xff] }
 0x30b   :  { %v2680_v20 = vpop.eup %2679 }
 0x30c   :  { %v595_v21 = vadd.f32 1.0, %v2680_v20  ;;  %v2682_v23 = vpop.eup %2681 }
 0x30d   :  { %v596_v28 = vadd.f32 1.0, %v2682_v23  ;;  %v2684_v38 = vpop.eup %2683 }
 0x30e   :  { %2687 = vrcp.f32 %v595_v21  ;;  %v2686_v29 = vpop.eup %2685 }
 0x30f   :  { %2689 = vrcp.f32 %v596_v28  ;;  %v597_v43 = vadd.f32 1.0, %v2686_v29 }
 0x311   :  { %2691 = vrcp.f32 %v597_v43 }
 0x318   :  { %v2688_v34 = vpop.eup %2687 }
 0x319   :  { %v606_v35 = vmul.f32 %v2688_v34, %v2684_v38  ;;  %v2690_v36 = vpop.eup %2689 }
 0x31a   :  { %v605_v44 = vmul.f32 %v2690_v36, %v3241_v13  ;;  %v2065_v36 = vld [vmem:[%s3561_s0 + $0x70] sm:$0xff] }
 0x31b   :  { %v2692_v50 = vpop.eup %2691 }
 0x31c   :  { %v3297_v47 = vadd.f32 %v606_v35, %v605_v44  ;;  %v2066_v44 = vld [vmem:[%s3561_s0 + $0x78] sm:$0xff] }
 0x31e   :  { %2693 = vtanh.f32 %v3297_v47 }
 0x328   :  { %v2694_v51 = vpop.eup %2693 }
 0x329   :  { %v609_v53 = vmul.f32 %v2694_v51, %v2692_v50 }
 0x32b   :  { %682 = vmatmul.mubr.f32.vlgmr.msra.gmra.mrb[6].mxu0 %v609_v53  ;;  %v1615_v56 = vcombine.high %v609_v53, %v609_v53  ;;  %v1622_v57 = vrot.slane %v609_v53, %v3186_v54  ;;  %753 = vmatmul.mubr.f32.vlgmr.msra.gmra.mrb[6].mxu1 %v609_v53 }
 0x32c   :  { %2389 = vmatpush1.bf16.msra.mxu0 %v2861_v8  ;;  %2421 = vmatpush1.bf16.msra.mxu1 %v2910_v25 }
 0x32d   :  { %v1629_v59 = vrot.slane %v1615_v56, %v3186_v54  ;;  %v1630_v13 = vcombine.high %v1622_v57, %v1622_v57  ;;  %v1638_v60 = vrot.slane %v1622_v57, %v3186_v54  ;;  %2106 = vst.sshfl [vmem:[#allocation5 + $0x2] sm:$0x1 pattern:$0x73625140] %v1622_v57  ;;  %2391 = vmatprep.subr.bf16.mxu0 %v2863_v9 }
 0x32e   :  { %2423 = vmatprep.subr.bf16.mxu1 %v2935_v33  ;;  %854 = vmatprep.mubr.f32.mxu0 %v2799_v7 }
 0x32f   :  { %925 = vmatprep.mubr.f32.mxu1 %v2799_v7  ;;  %v1631_v61 = vcombine.high %v1629_v59, %v1629_v59  ;;  %v1645_v63 = vrot.slane %v1629_v59, %v3186_v54  ;;  %v1652_v1 = vrot.slane %v1630_v13, %v3186_v54  ;;  %v1660_v2 = vcombine.high %v1638_v60, %v1638_v60 }
 0x330   :  { %2107 = vst.sshfl [vmem:[#allocation5 + $0xa] sm:$0x1 pattern:$0x73625140] %v1630_v13  ;;  %2393 = vmatpush1.bf16.msra.mxu0 %v2879_v14  ;;  %2425 = vmatpush1.bf16.msra.mxu1 %v2946_v37 }
 0x331   :  { %2108 = vst.sshfl [vmem:[#allocation5 + $0x22] sm:$0x1 pattern:$0x73625140] %v1629_v59  ;;  %v1659_v4 = vrot.slane %v1631_v61, %v3186_v54  ;;  %v1661_v5 = vcombine.high %v1645_v63, %v1645_v63  ;;  %v1662_v10 = vcombine.high %v1652_v1, %v1652_v1  ;;  %1674 = vst [vmem:[#allocation5 + $0x12] sm:$0x1] %v1660_v2  ;;  %2395 = vmatprep.subr.bf16.mxu0 %v2888_v17 }
 0x332   :  { %2109 = vst.sshfl [vmem:[#allocation5 + $0x2a] sm:$0x1 pattern:$0x73625140] %v1631_v61  ;;  %2427 = vmatprep.subr.bf16.mxu1 %v2970_v45 }
 0x333   :  { %v1663_v12 = vcombine.high %v1659_v4, %v1659_v4  ;;  %1675 = vst [vmem:[#allocation5 + $0x1a] sm:$0x1] %v1662_v10  ;;  %1678 = vst [vmem:[#allocation5 + $0x32] sm:$0x1] %v1661_v5 }
 0x334   :  { %2397 = vmatpush1.bf16.msra.mxu0 %v2913_v26  ;;  %2429 = vmatpush1.bf16.msra.mxu1 %v2979_v48 }
 0x335   :  { %1679 = vst [vmem:[#allocation5 + $0x3a] sm:$0x1] %v1663_v12  ;;  %2399 = vmatprep.subr.bf16.mxu0 %v2926_v30  ;;  %2431 = vmatprep.subr.bf16.mxu1 %v2991_v52 }
 0x338   :  { %2401 = vmatpush1.bf16.msra.mxu0 %v2962_v42  ;;  %2433 = vmatpush1.bf16.msra.mxu1 %v3021_v62 }
 0x339   :  { %2403 = vmatprep.subr.bf16.mxu0 %v2973_v46  ;;  %2435 = vmatprep.subr.bf16.mxu1 %v3027_v0 }
 0x33c   :  { %2405 = vmatpush1.bf16.msra.mxu0 %v3000_v55  ;;  %2437 = vmatpush1.bf16.msra.mxu1 %v3060_v16 }
 0x33d   :  { %2407 = vmatprep.subr.bf16.mxu0 %v3009_v58  ;;  %2439 = vmatprep.subr.bf16.mxu1 %v3063_v18 }
 0x340   :  { %2409 = vmatpush1.bf16.msra.mxu0 %v3042_v6  ;;  %2441 = vmatpush1.bf16.msra.mxu1 %v3090_v31 }
 0x341   :  { %2411 = vmatprep.subr.bf16.mxu0 %v3048_v11  ;;  %2443 = vmatprep.subr.bf16.mxu1 %v3093_v32 }
 0x344   :  { %2413 = vmatpush1.bf16.msra.mxu0 %v3078_v24  ;;  %2445 = vmatpush1.bf16.msra.mxu1 %v3112_v40 }
 0x345   :  { %2415 = vmatprep.subr.bf16.mxu0 %v3081_v27  ;;  %2447 = vmatprep.subr.bf16.mxu1 %v3115_v41 }
 0x348   :  { %2417 = vmatpush1.bf16.msra.mxu0 %v3108_v39  ;;  %2449 = vmatpush1.bf16.msra.mxu1 %v3128_v49 }
 0x349   :  { %2451 = vmatprep.subr.bf16.mxu0 %v2848_v3  ;;  %2483 = vmatprep.subr.bf16.mxu1 %v2902_v22 }
 0x3fe   :  { %v683_v20 = vpop.f32.mrb[6].mxu0  ;;  %v754_v21 = vpop.f32.mrb[6].mxu1 }
 0x3ff   :  { %v684_v23 = vadd.f32 %v2063_v15, %v683_v20  ;;  %v685_v28 = vpop.f32.mrb[7].mxu0  ;;  %v756_v38 = vpop.f32.mrb[7].mxu1  ;;  %v755_v43 = vadd.f32 %v2065_v36, %v754_v21 }
 0x400   :  { %v686_v29 = vadd.f32 %v2064_v19, %v685_v28  ;;  %v757_v50 = vadd.f32 %v2066_v44, %v756_v38 }
 0x401   :  { %v2067_v34 = vmul.f32 -1.442695, %v684_v23  ;;  %v2069_v51 = vmul.f32 -1.442695, %v755_v43 }
 0x402   :  { %v2068_v35 = vmul.f32 -1.442695, %v686_v29 }
 0x403   :  { %2695 = vpow2.f32 %v2067_v34 }
 0x404   :  { %2697 = vpow2.f32 %v2068_v35 }
 0x405   :  { %2699 = vtanh.f32 %v757_v50  ;;  %v2070_v50 = vld [vmem:[%s3561_s0 + $0x80] sm:$0xff] }
 0x406   :  { %2701 = vpow2.f32 %v2069_v51  ;;  %v2071_v51 = vld [vmem:[%s3561_s0 + $0x88] sm:$0xff] }
 0x40d   :  { %v2696_v53 = vpop.eup %2695 }
 0x40e   :  { %v768_v56 = vadd.f32 1.0, %v2696_v53  ;;  %v2698_v57 = vpop.eup %2697 }
 0x40f   :  { %v769_v59 = vadd.f32 1.0, %v2698_v57  ;;  %v2700_v13 = vpop.eup %2699 }
 0x410   :  { %2703 = vrcp.f32 %v768_v56  ;;  %v2702_v60 = vpop.eup %2701 }
 0x411   :  { %2705 = vrcp.f32 %v769_v59  ;;  %v770_v2 = vadd.f32 1.0, %v2702_v60 }
 0x413   :  { %2707 = vrcp.f32 %v770_v2 }
 0x41a   :  { %v2704_v61 = vpop.eup %2703 }
 0x41b   :  { %v779_v63 = vmul.f32 %v2704_v61, %v2700_v13  ;;  %v2706_v1 = vpop.eup %2705 }
 0x41c   :  { %v778_v4 = vmul.f32 %v2706_v1, %v3297_v47  ;;  %v2072_v1 = vld [vmem:[%s3561_s0 + $0x90] sm:$0xff] }
 0x41d   :  { %v2708_v10 = vpop.eup %2707 }
 0x41e   :  { %v3353_v5 = vadd.f32 %v779_v63, %v778_v4  ;;  %v2073_v4 = vld [vmem:[%s3561_s0 + $0x98] sm:$0xff] }
 0x420   :  { %2709 = vtanh.f32 %v3353_v5 }
 0x42a   :  { %v2710_v12 = vpop.eup %2709 }
 0x42b   :  { %v782_v15 = vmul.f32 %v2710_v12, %v2708_v10 }
 0x42d   :  { %855 = vmatmul.mubr.f32.vlgmr.msra.gmra.mrb[8].mxu0 %v782_v15  ;;  %v1682_v19 = vcombine.high %v782_v15, %v782_v15  ;;  %v1689_v20 = vrot.slane %v782_v15, %v3186_v54  ;;  %926 = vmatmul.mubr.f32.vlgmr.msra.gmra.mrb[8].mxu1 %v782_v15 }
 0x42e   :  { %2453 = vmatpush1.bf16.msra.mxu0 %v2861_v8  ;;  %2485 = vmatpush1.bf16.msra.mxu1 %v2910_v25 }
 0x42f   :  { %v1696_v21 = vrot.slane %v1682_v19, %v3186_v54  ;;  %v1697_v47 = vcombine.high %v1689_v20, %v1689_v20  ;;  %v1705_v23 = vrot.slane %v1689_v20, %v3186_v54  ;;  %2110 = vst.sshfl [vmem:[#allocation5 + $0x3] sm:$0x1 pattern:$0x73625140] %v1689_v20  ;;  %2455 = vmatprep.subr.bf16.mxu0 %v2863_v9 }
 0x430   :  { %2487 = vmatprep.subr.bf16.mxu1 %v2935_v33  ;;  %1027 = vmatprep.mubr.f32.mxu0 %v2799_v7 }
 0x431   :  { %1098 = vmatprep.mubr.f32.mxu1 %v2799_v7  ;;  %v1698_v28 = vcombine.high %v1696_v21, %v1696_v21  ;;  %v1712_v38 = vrot.slane %v1696_v21, %v3186_v54  ;;  %v1719_v29 = vrot.slane %v1697_v47, %v3186_v54  ;;  %v1727_v34 = vcombine.high %v1705_v23, %v1705_v23 }
 0x432   :  { %2111 = vst.sshfl [vmem:[#allocation5 + $0xb] sm:$0x1 pattern:$0x73625140] %v1697_v47  ;;  %2457 = vmatpush1.bf16.msra.mxu0 %v2879_v14  ;;  %2489 = vmatpush1.bf16.msra.mxu1 %v2946_v37 }
 0x433   :  { %2112 = vst.sshfl [vmem:[#allocation5 + $0x23] sm:$0x1 pattern:$0x73625140] %v1696_v21  ;;  %v1726_v35 = vrot.slane %v1698_v28, %v3186_v54  ;;  %v1728_v36 = vcombine.high %v1712_v38, %v1712_v38  ;;  %v1729_v43 = vcombine.high %v1719_v29, %v1719_v29  ;;  %1741 = vst [vmem:[#allocation5 + $0x13] sm:$0x1] %v1727_v34  ;;  %2459 = vmatprep.subr.bf16.mxu0 %v2888_v17 }
 0x434   :  { %2113 = vst.sshfl [vmem:[#allocation5 + $0x2b] sm:$0x1 pattern:$0x73625140] %v1698_v28  ;;  %2491 = vmatprep.subr.bf16.mxu1 %v2970_v45 }
 0x435   :  { %v1730_v44 = vcombine.high %v1726_v35, %v1726_v35  ;;  %1742 = vst [vmem:[#allocation5 + $0x1b] sm:$0x1] %v1729_v43  ;;  %1745 = vst [vmem:[#allocation5 + $0x33] sm:$0x1] %v1728_v36 }
 0x436   :  { %2461 = vmatpush1.bf16.msra.mxu0 %v2913_v26  ;;  %2493 = vmatpush1.bf16.msra.mxu1 %v2979_v48 }
 0x437   :  { %1746 = vst [vmem:[#allocation5 + $0x3b] sm:$0x1] %v1730_v44  ;;  %2463 = vmatprep.subr.bf16.mxu0 %v2926_v30  ;;  %2495 = vmatprep.subr.bf16.mxu1 %v2991_v52 }
 0x43a   :  { %2465 = vmatpush1.bf16.msra.mxu0 %v2962_v42  ;;  %2497 = vmatpush1.bf16.msra.mxu1 %v3021_v62 }
 0x43b   :  { %2467 = vmatprep.subr.bf16.mxu0 %v2973_v46  ;;  %2499 = vmatprep.subr.bf16.mxu1 %v3027_v0 }
 0x43e   :  { %2469 = vmatpush1.bf16.msra.mxu0 %v3000_v55  ;;  %2501 = vmatpush1.bf16.msra.mxu1 %v3060_v16 }
 0x43f   :  { %2471 = vmatprep.subr.bf16.mxu0 %v3009_v58  ;;  %2503 = vmatprep.subr.bf16.mxu1 %v3063_v18 }
 0x442   :  { %2473 = vmatpush1.bf16.msra.mxu0 %v3042_v6  ;;  %2505 = vmatpush1.bf16.msra.mxu1 %v3090_v31 }
 0x443   :  { %2475 = vmatprep.subr.bf16.mxu0 %v3048_v11  ;;  %2507 = vmatprep.subr.bf16.mxu1 %v3093_v32 }
 0x446   :  { %2477 = vmatpush1.bf16.msra.mxu0 %v3078_v24  ;;  %2509 = vmatpush1.bf16.msra.mxu1 %v3112_v40 }
 0x447   :  { %2479 = vmatprep.subr.bf16.mxu0 %v3081_v27  ;;  %2511 = vmatprep.subr.bf16.mxu1 %v3115_v41 }
 0x44a   :  { %2481 = vmatpush1.bf16.msra.mxu0 %v3108_v39  ;;  %2513 = vmatpush1.bf16.msra.mxu1 %v3128_v49 }
 0x44b   :  { %2515 = vmatprep.subr.bf16.mxu0 %v2848_v3  ;;  %2547 = vmatprep.subr.bf16.mxu1 %v2902_v22 }
 0x500   :  { %v856_v53 = vpop.f32.mrb[8].mxu0  ;;  %v927_v56 = vpop.f32.mrb[8].mxu1 }
 0x501   :  { %v857_v57 = vadd.f32 %v2070_v50, %v856_v53  ;;  %v858_v59 = vpop.f32.mrb[9].mxu0  ;;  %v929_v13 = vpop.f32.mrb[9].mxu1  ;;  %v928_v2 = vadd.f32 %v2072_v1, %v927_v56 }
 0x502   :  { %v859_v60 = vadd.f32 %v2071_v51, %v858_v59  ;;  %v930_v10 = vadd.f32 %v2073_v4, %v929_v13 }
 0x503   :  { %v2074_v61 = vmul.f32 -1.442695, %v857_v57  ;;  %v2076_v12 = vmul.f32 -1.442695, %v928_v2 }
 0x504   :  { %v2075_v63 = vmul.f32 -1.442695, %v859_v60 }
 0x505   :  { %2711 = vpow2.f32 %v2074_v61 }
 0x506   :  { %2713 = vpow2.f32 %v2075_v63 }
 0x507   :  { %2715 = vtanh.f32 %v930_v10  ;;  %v2077_v10 = vld [vmem:[%s3561_s0 + $0xa0] sm:$0xff] }
 0x508   :  { %2717 = vpow2.f32 %v2076_v12  ;;  %v2078_v12 = vld [vmem:[%s3561_s0 + $0xa8] sm:$0xff] }
 0x50f   :  { %v2712_v15 = vpop.eup %2711 }
 0x510   :  { %v941_v19 = vadd.f32 1.0, %v2712_v15  ;;  %v2714_v20 = vpop.eup %2713 }
 0x511   :  { %v942_v21 = vadd.f32 1.0, %v2714_v20  ;;  %v2716_v47 = vpop.eup %2715 }
 0x512   :  { %2719 = vrcp.f32 %v941_v19  ;;  %v2718_v23 = vpop.eup %2717 }
 0x513   :  { %2721 = vrcp.f32 %v942_v21  ;;  %v943_v34 = vadd.f32 1.0, %v2718_v23 }
 0x515   :  { %2723 = vrcp.f32 %v943_v34 }
 0x51c   :  { %v2720_v28 = vpop.eup %2719 }
 0x51d   :  { %v952_v38 = vmul.f32 %v2720_v28, %v2716_v47  ;;  %v2722_v29 = vpop.eup %2721 }
 0x51e   :  { %v951_v35 = vmul.f32 %v2722_v29, %v3353_v5  ;;  %v2080_v29 = vld [vmem:[%s3561_s0 + $0xb8] sm:$0xff] }
 0x51f   :  { %v2724_v43 = vpop.eup %2723 }
 0x520   :  { %v3409_v36 = vadd.f32 %v952_v38, %v951_v35 }
 0x522   :  { %2725 = vtanh.f32 %v3409_v36 }
 0x52c   :  { %v2726_v44 = vpop.eup %2725 }
 0x52d   :  { %v955_v50 = vmul.f32 %v2726_v44, %v2724_v43 }
 0x52f   :  { %1028 = vmatmul.mubr.f32.vlgmr.msra.gmra.mrb[10].mxu0 %v955_v50  ;;  %v1749_v51 = vcombine.high %v955_v50, %v955_v50  ;;  %v1756_v53 = vrot.slane %v955_v50, %v3186_v54  ;;  %1099 = vmatmul.mubr.f32.vlgmr.msra.gmra.mrb[10].mxu1 %v955_v50 }
 0x530   :  { %2517 = vmatpush1.bf16.msra.mxu0 %v2861_v8  ;;  %2549 = vmatpush1.bf16.msra.mxu1 %v2910_v25 }
 0x531   :  { %v1763_v56 = vrot.slane %v1749_v51, %v3186_v54  ;;  %v1764_v5 = vcombine.high %v1756_v53, %v1756_v53  ;;  %v1772_v57 = vrot.slane %v1756_v53, %v3186_v54  ;;  %2114 = vst.sshfl [vmem:[#allocation5 + $0x4] sm:$0x1 pattern:$0x73625140] %v1756_v53  ;;  %2519 = vmatprep.subr.bf16.mxu0 %v2863_v9 }
 0x532   :  { %2551 = vmatprep.subr.bf16.mxu1 %v2935_v33  ;;  %1200 = vmatprep.mubr.f32.mxu0 %v2799_v7 }
 0x533   :  { %1271 = vmatprep.mubr.f32.mxu1 %v2799_v7  ;;  %v1765_v59 = vcombine.high %v1763_v56, %v1763_v56  ;;  %v1779_v13 = vrot.slane %v1763_v56, %v3186_v54  ;;  %v1786_v60 = vrot.slane %v1764_v5, %v3186_v54  ;;  %v1794_v61 = vcombine.high %v1772_v57, %v1772_v57 }
 0x534   :  { %2115 = vst.sshfl [vmem:[#allocation5 + $0xc] sm:$0x1 pattern:$0x73625140] %v1764_v5  ;;  %2521 = vmatpush1.bf16.msra.mxu0 %v2879_v14  ;;  %2553 = vmatpush1.bf16.msra.mxu1 %v2946_v37 }
 0x535   :  { %2116 = vst.sshfl [vmem:[#allocation5 + $0x24] sm:$0x1 pattern:$0x73625140] %v1763_v56  ;;  %v1793_v63 = vrot.slane %v1765_v59, %v3186_v54  ;;  %v1795_v1 = vcombine.high %v1779_v13, %v1779_v13  ;;  %v1796_v2 = vcombine.high %v1786_v60, %v1786_v60  ;;  %1808 = vst [vmem:[#allocation5 + $0x14] sm:$0x1] %v1794_v61  ;;  %2523 = vmatprep.subr.bf16.mxu0 %v2888_v17 }
 0x536   :  { %2117 = vst.sshfl [vmem:[#allocation5 + $0x2c] sm:$0x1 pattern:$0x73625140] %v1765_v59  ;;  %2555 = vmatprep.subr.bf16.mxu1 %v2970_v45 }
 0x537   :  { %v1797_v4 = vcombine.high %v1793_v63, %v1793_v63  ;;  %1809 = vst [vmem:[#allocation5 + $0x1c] sm:$0x1] %v1796_v2  ;;  %1812 = vst [vmem:[#allocation5 + $0x34] sm:$0x1] %v1795_v1 }
 0x538   :  { %2525 = vmatpush1.bf16.msra.mxu0 %v2913_v26  ;;  %2557 = vmatpush1.bf16.msra.mxu1 %v2979_v48 }
 0x539   :  { %1813 = vst [vmem:[#allocation5 + $0x3c] sm:$0x1] %v1797_v4  ;;  %2527 = vmatprep.subr.bf16.mxu0 %v2926_v30  ;;  %2559 = vmatprep.subr.bf16.mxu1 %v2991_v52 }
 0x53c   :  { %2529 = vmatpush1.bf16.msra.mxu0 %v2962_v42  ;;  %2561 = vmatpush1.bf16.msra.mxu1 %v3021_v62 }
 0x53d   :  { %2531 = vmatprep.subr.bf16.mxu0 %v2973_v46  ;;  %2563 = vmatprep.subr.bf16.mxu1 %v3027_v0 }
 0x540   :  { %2533 = vmatpush1.bf16.msra.mxu0 %v3000_v55  ;;  %2565 = vmatpush1.bf16.msra.mxu1 %v3060_v16 }
 0x541   :  { %2535 = vmatprep.subr.bf16.mxu0 %v3009_v58  ;;  %2567 = vmatprep.subr.bf16.mxu1 %v3063_v18 }
 0x544   :  { %2537 = vmatpush1.bf16.msra.mxu0 %v3042_v6  ;;  %2569 = vmatpush1.bf16.msra.mxu1 %v3090_v31 }
 0x545   :  { %2539 = vmatprep.subr.bf16.mxu0 %v3048_v11  ;;  %2571 = vmatprep.subr.bf16.mxu1 %v3093_v32 }
 0x548   :  { %2541 = vmatpush1.bf16.msra.mxu0 %v3078_v24  ;;  %2573 = vmatpush1.bf16.msra.mxu1 %v3112_v40 }
 0x549   :  { %2543 = vmatprep.subr.bf16.mxu0 %v3081_v27  ;;  %2575 = vmatprep.subr.bf16.mxu1 %v3115_v41 }
 0x54c   :  { %2545 = vmatpush1.bf16.msra.mxu0 %v3108_v39  ;;  %2577 = vmatpush1.bf16.msra.mxu1 %v3128_v49 }
 0x54d   :  { %2579 = vmatprep.subr.bf16.mxu0 %v2848_v3  ;;  %2611 = vmatprep.subr.bf16.mxu1 %v2902_v22  ;;  %v2079_v3 = vld [vmem:[%s3561_s0 + $0xb0] sm:$0xff] }
 0x602   :  { %v1029_v15 = vpop.f32.mrb[10].mxu0  ;;  %v1100_v19 = vpop.f32.mrb[10].mxu1 }
 0x603   :  { %v1030_v20 = vadd.f32 %v2077_v10, %v1029_v15  ;;  %v1031_v21 = vpop.f32.mrb[11].mxu0  ;;  %v1102_v47 = vpop.f32.mrb[11].mxu1  ;;  %v1101_v22 = vadd.f32 %v2079_v3, %v1100_v19 }
 0x604   :  { %v1032_v23 = vadd.f32 %v2078_v12, %v1031_v21  ;;  %v1103_v34 = vadd.f32 %v2080_v29, %v1102_v47 }
 0x605   :  { %v2081_v28 = vmul.f32 -1.442695, %v1030_v20  ;;  %v2083_v35 = vmul.f32 -1.442695, %v1101_v22 }
 0x606   :  { %v2082_v38 = vmul.f32 -1.442695, %v1032_v23 }
 0x607   :  { %2727 = vpow2.f32 %v2081_v28 }
 0x608   :  { %2729 = vpow2.f32 %v2082_v38 }
 0x609   :  { %2731 = vtanh.f32 %v1103_v34 }
 0x60a   :  { %2733 = vpow2.f32 %v2083_v35 }
 0x611   :  { %v2728_v43 = vpop.eup %2727 }
 0x612   :  { %v1114_v44 = vadd.f32 1.0, %v2728_v43  ;;  %v2730_v50 = vpop.eup %2729 }
 0x613   :  { %v1115_v51 = vadd.f32 1.0, %v2730_v50  ;;  %v2732_v53 = vpop.eup %2731 }
 0x614   :  { %2735 = vrcp.f32 %v1114_v44  ;;  %v2734_v56 = vpop.eup %2733 }
 0x615   :  { %2737 = vrcp.f32 %v1115_v51  ;;  %v1116_v13 = vadd.f32 1.0, %v2734_v56 }
 0x617   :  { %2739 = vrcp.f32 %v1116_v13  ;;  %v2092_v13 = vld [vmem:[%s3561_s0 + $0xe8] sm:$0xff] }
 0x61e   :  { %v2736_v5 = vpop.eup %2735 }
 0x61f   :  { %v1125_v57 = vmul.f32 %v2736_v5, %v2732_v53  ;;  %v2738_v59 = vpop.eup %2737 }
 0x620   :  { %v1124_v60 = vmul.f32 %v2738_v59, %v3409_v36  ;;  %v2091_v59 = vld [vmem:[%s3561_s0 + $0xe0] sm:$0xff] }
 0x621   :  { %v2740_v63 = vpop.eup %2739 }
 0x622   :  { %v3465_v61 = vadd.f32 %v1125_v57, %v1124_v60 }
 0x624   :  { %2741 = vtanh.f32 %v3465_v61 }
 0x62e   :  { %v2742_v1 = vpop.eup %2741 }
 0x62f   :  { %v1128_v2 = vmul.f32 %v2742_v1, %v2740_v63 }
 0x631   :  { %1201 = vmatmul.mubr.f32.vlgmr.msra.gmra.mrb[12].mxu0 %v1128_v2  ;;  %v1816_v4 = vcombine.high %v1128_v2, %v1128_v2  ;;  %v1823_v10 = vrot.slane %v1128_v2, %v3186_v54  ;;  %1272 = vmatmul.mubr.f32.vlgmr.msra.gmra.mrb[12].mxu1 %v1128_v2 }
 0x632   :  { %2581 = vmatpush1.bf16.msra.mxu0 %v2861_v8  ;;  %2613 = vmatpush1.bf16.msra.mxu1 %v2910_v25 }
 0x633   :  { %v1830_v12 = vrot.slane %v1816_v4, %v3186_v54  ;;  %v1831_v36 = vcombine.high %v1823_v10, %v1823_v10  ;;  %v1839_v15 = vrot.slane %v1823_v10, %v3186_v54  ;;  %2118 = vst.sshfl [vmem:[#allocation5 + $0x5] sm:$0x1 pattern:$0x73625140] %v1823_v10  ;;  %2583 = vmatprep.subr.bf16.mxu0 %v2863_v9 }
 0x634   :  { %2615 = vmatprep.subr.bf16.mxu1 %v2935_v33  ;;  %1373 = vmatprep.mubr.f32.mxu0 %v2799_v7 }
 0x635   :  { %1444 = vmatprep.mubr.f32.mxu1 %v2799_v7  ;;  %v1832_v19 = vcombine.high %v1830_v12, %v1830_v12  ;;  %v1846_v20 = vrot.slane %v1830_v12, %v3186_v54  ;;  %v1853_v8 = vrot.slane %v1831_v36, %v3186_v54  ;;  %v1861_v25 = vcombine.high %v1839_v15, %v1839_v15 }
 0x636   :  { %2119 = vst.sshfl [vmem:[#allocation5 + $0xd] sm:$0x1 pattern:$0x73625140] %v1831_v36  ;;  %2585 = vmatpush1.bf16.msra.mxu0 %v2879_v14  ;;  %2617 = vmatpush1.bf16.msra.mxu1 %v2946_v37  ;;  %v2084_v14 = vld [vmem:[%s3561_s0 + $0xc0] sm:$0xff]  ;;  %v2093_v36 = vld [vmem:[%s3561_s0 + $0xf0] sm:$0xff] }
 0x637   :  { %2120 = vst.sshfl [vmem:[#allocation5 + $0x25] sm:$0x1 pattern:$0x73625140] %v1830_v12  ;;  %v1860_v9 = vrot.slane %v1832_v19, %v3186_v54  ;;  %v1862_v21 = vcombine.high %v1846_v20, %v1846_v20  ;;  %v1863_v33 = vcombine.high %v1853_v8, %v1853_v8  ;;  %1875 = vst [vmem:[#allocation5 + $0x15] sm:$0x1] %v1861_v25  ;;  %2587 = vmatprep.subr.bf16.mxu0 %v2888_v17 }
 0x638   :  { %2121 = vst.sshfl [vmem:[#allocation5 + $0x2d] sm:$0x1 pattern:$0x73625140] %v1832_v19  ;;  %2619 = vmatprep.subr.bf16.mxu1 %v2970_v45  ;;  %v2085_v17 = vld [vmem:[%s3561_s0 + $0xc8] sm:$0xff]  ;;  %v2094_v19 = vld [vmem:[%s3561_s0 + $0xf8] sm:$0xff] }
 0x639   :  { %v1864_v7 = vcombine.high %v1860_v9, %v1860_v9  ;;  %1876 = vst [vmem:[#allocation5 + $0x1d] sm:$0x1] %v1863_v33  ;;  %1879 = vst [vmem:[#allocation5 + $0x35] sm:$0x1] %v1862_v21 }
 0x63a   :  { %2589 = vmatpush1.bf16.msra.mxu0 %v2913_v26  ;;  %2621 = vmatpush1.bf16.msra.mxu1 %v2979_v48 }
 0x63b   :  { %1880 = vst [vmem:[#allocation5 + $0x3d] sm:$0x1] %v1864_v7  ;;  %2591 = vmatprep.subr.bf16.mxu0 %v2926_v30  ;;  %2623 = vmatprep.subr.bf16.mxu1 %v2991_v52 }
 0x63e   :  { %2593 = vmatpush1.bf16.msra.mxu0 %v2962_v42  ;;  %2625 = vmatpush1.bf16.msra.mxu1 %v3021_v62  ;;  %v2087_v62 = vld [vmem:[%s3561_s0 + $0xd8] sm:$0xff] }
 0x63f   :  { %2595 = vmatprep.subr.bf16.mxu0 %v2973_v46  ;;  %2627 = vmatprep.subr.bf16.mxu1 %v3027_v0 }
 0x642   :  { %2597 = vmatpush1.bf16.msra.mxu0 %v3000_v55  ;;  %2629 = vmatpush1.bf16.msra.mxu1 %v3060_v16  ;;  %v2086_v55 = vld [vmem:[%s3561_s0 + $0xd0] sm:$0xff] }
 0x643   :  { %2599 = vmatprep.subr.bf16.mxu0 %v3009_v58  ;;  %2631 = vmatprep.subr.bf16.mxu1 %v3063_v18 }
 0x646   :  { %2601 = vmatpush1.bf16.msra.mxu0 %v3042_v6  ;;  %2633 = vmatpush1.bf16.msra.mxu1 %v3090_v31 }
 0x647   :  { %2603 = vmatprep.subr.bf16.mxu0 %v3048_v11  ;;  %2635 = vmatprep.subr.bf16.mxu1 %v3093_v32 }
 0x64a   :  { %2605 = vmatpush1.bf16.msra.mxu0 %v3078_v24  ;;  %2637 = vmatpush1.bf16.msra.mxu1 %v3112_v40 }
 0x64b   :  { %2607 = vmatprep.subr.bf16.mxu0 %v3081_v27  ;;  %2639 = vmatprep.subr.bf16.mxu1 %v3115_v41 }
 0x64e   :  { %2609 = vmatpush1.bf16.msra.mxu0 %v3108_v39  ;;  %2641 = vmatpush1.bf16.msra.mxu1 %v3128_v49 }
 0x704   :  { %v1202_v26 = vpop.f32.mrb[12].mxu0  ;;  %v1273_v30 = vpop.f32.mrb[12].mxu1 }
 0x705   :  { %v1203_v37 = vadd.f32 %v2084_v14, %v1202_v26  ;;  %v1204_v42 = vpop.f32.mrb[13].mxu0  ;;  %v1275_v45 = vpop.f32.mrb[13].mxu1  ;;  %v1274_v58 = vadd.f32 %v2086_v55, %v1273_v30 }
 0x706   :  { %v1205_v46 = vadd.f32 %v2085_v17, %v1204_v42  ;;  %v1276_v0 = vadd.f32 %v2087_v62, %v1275_v45 }
 0x707   :  { %v2088_v48 = vmul.f32 -1.442695, %v1203_v37  ;;  %v2090_v6 = vmul.f32 -1.442695, %v1274_v58 }
 0x708   :  { %v2089_v52 = vmul.f32 -1.442695, %v1205_v46 }
 0x709   :  { %2743 = vpow2.f32 %v2088_v48 }
 0x70a   :  { %2745 = vpow2.f32 %v2089_v52 }
 0x70b   :  { %2747 = vtanh.f32 %v1276_v0 }
 0x70c   :  { %2749 = vpow2.f32 %v2090_v6 }
 0x713   :  { %v2744_v11 = vpop.eup %2743 }
 0x714   :  { %v1287_v16 = vadd.f32 1.0, %v2744_v11  ;;  %v2746_v18 = vpop.eup %2745 }
 0x715   :  { %v1288_v24 = vadd.f32 1.0, %v2746_v18  ;;  %v2748_v27 = vpop.eup %2747 }
 0x716   :  { %2751 = vrcp.f32 %v1287_v16  ;;  %v2750_v31 = vpop.eup %2749 }
 0x717   :  { %2753 = vrcp.f32 %v1288_v24  ;;  %v1289_v41 = vadd.f32 1.0, %v2750_v31 }
 0x719   :  { %2755 = vrcp.f32 %v1289_v41 }
 0x720   :  { %v2752_v32 = vpop.eup %2751 }
 0x721   :  { %v1298_v39 = vmul.f32 %v2752_v32, %v2748_v27  ;;  %v2754_v40 = vpop.eup %2753 }
 0x722   :  { %v1297_v49 = vmul.f32 %v2754_v40, %v3465_v61 }
 0x723   :  { %v2756_v23 = vpop.eup %2755 }
 0x724   :  { %v1299_v47 = vadd.f32 %v1298_v39, %v1297_v49 }
 0x726   :  { %2757 = vtanh.f32 %v1299_v47 }
 0x730   :  { %v2758_v28 = vpop.eup %2757 }
 0x731   :  { %v1301_v38 = vmul.f32 %v2758_v28, %v2756_v23 }
 0x733   :  { %1374 = vmatmul.mubr.f32.vlgmr.msra.gmra.mrb[14].mxu0 %v1301_v38  ;;  %v1883_v3 = vcombine.high %v1301_v38, %v1301_v38  ;;  %v1890_v22 = vrot.slane %v1301_v38, %v3186_v54  ;;  %1445 = vmatmul.mubr.f32.vlgmr.msra.gmra.mrb[14].mxu1 %v1301_v38 }
 0x735   :  { %v1897_v29 = vrot.slane %v1883_v3, %v3186_v54  ;;  %v1898_v34 = vcombine.high %v1890_v22, %v1890_v22  ;;  %v1906_v35 = vrot.slane %v1890_v22, %v3186_v54  ;;  %2122 = vst.sshfl [vmem:[#allocation5 + $0x6] sm:$0x1 pattern:$0x73625140] %v1890_v22 }
 0x737   :  { %v1899_v43 = vcombine.high %v1897_v29, %v1897_v29  ;;  %v1913_v44 = vrot.slane %v1897_v29, %v3186_v54  ;;  %v1920_v50 = vrot.slane %v1898_v34, %v3186_v54  ;;  %v1928_v51 = vcombine.high %v1906_v35, %v1906_v35  ;;  %2123 = vst.sshfl [vmem:[#allocation5 + $0xe] sm:$0x1 pattern:$0x73625140] %v1898_v34 }
 0x738   :  { %2124 = vst.sshfl [vmem:[#allocation5 + $0x26] sm:$0x1 pattern:$0x73625140] %v1897_v29 }
 0x739   :  { %v1927_v53 = vrot.slane %v1899_v43, %v3186_v54  ;;  %v1929_v56 = vcombine.high %v1913_v44, %v1913_v44  ;;  %v1930_v5 = vcombine.high %v1920_v50, %v1920_v50  ;;  %1942 = vst [vmem:[#allocation5 + $0x16] sm:$0x1] %v1928_v51  ;;  %2125 = vst.sshfl [vmem:[#allocation5 + $0x2e] sm:$0x1 pattern:$0x73625140] %v1899_v43 }
 0x73b   :  { %v1931_v57 = vcombine.high %v1927_v53, %v1927_v53  ;;  %1943 = vst [vmem:[#allocation5 + $0x1e] sm:$0x1] %v1930_v5  ;;  %1946 = vst [vmem:[#allocation5 + $0x36] sm:$0x1] %v1929_v56 }
 0x73d   :  { %1947 = vst [vmem:[#allocation5 + $0x3e] sm:$0x1] %v1931_v57 }
 0x806   :  { %v1375_v60 = vpop.f32.mrb[14].mxu0  ;;  %v1446_v61 = vpop.f32.mrb[14].mxu1 }
 0x807   :  { %v1376_v63 = vadd.f32 %v2091_v59, %v1375_v60  ;;  %v1377_v1 = vpop.f32.mrb[15].mxu0  ;;  %v1448_v2 = vpop.f32.mrb[15].mxu1  ;;  %v1447_v15 = vadd.f32 %v2093_v36, %v1446_v61 }
 0x808   :  { %v1378_v4 = vadd.f32 %v2092_v13, %v1377_v1  ;;  %v1449_v20 = vadd.f32 %v2094_v19, %v1448_v2 }
 0x809   :  { %v2095_v10 = vmul.f32 -1.442695, %v1376_v63  ;;  %v2097_v8 = vmul.f32 -1.442695, %v1447_v15 }
 0x80a   :  { %v2096_v12 = vmul.f32 -1.442695, %v1378_v4 }
 0x80b   :  { %2759 = vpow2.f32 %v2095_v10 }
 0x80c   :  { %2761 = vpow2.f32 %v2096_v12 }
 0x80d   :  { %2763 = vtanh.f32 %v1449_v20 }
 0x80e   :  { %2765 = vpow2.f32 %v2097_v8 }
 0x815   :  { %v2760_v25 = vpop.eup %2759 }
 0x816   :  { %v1460_v9 = vadd.f32 1.0, %v2760_v25  ;;  %v2762_v21 = vpop.eup %2761 }
 0x817   :  { %v1461_v33 = vadd.f32 1.0, %v2762_v21  ;;  %v2764_v7 = vpop.eup %2763 }
 0x818   :  { %2767 = vrcp.f32 %v1460_v9  ;;  %v2766_v14 = vpop.eup %2765 }
 0x819   :  { %2769 = vrcp.f32 %v1461_v33  ;;  %v1462_v37 = vadd.f32 1.0, %v2766_v14 }
 0x81b   :  { %2771 = vrcp.f32 %v1462_v37 }
 0x822   :  { %v2768_v17 = vpop.eup %2767 }
 0x823   :  { %v1471_v26 = vmul.f32 %v2768_v17, %v2764_v7  ;;  %v2770_v30 = vpop.eup %2769 }
 0x824   :  { %v1470_v42 = vmul.f32 %v2770_v30, %v1299_v47 }
 0x825   :  { %v2772_v46 = vpop.eup %2771 }
 0x826   :  { %v1472_v45 = vadd.f32 %v1471_v26, %v1470_v42 }
 0x828   :  { %2773 = vtanh.f32 %v1472_v45  ;;  %2021 = vst [vmem:[%s3567_s6] sm:$0xff] %v1472_v45  ;;  %s2801_s6 = smov [#allocation5]  }
 0x829   :  { %s2027_s19 = sshll.u32 %s2801_s6, 4  ;;  %s2028_s19 = int_to_ptr.vmem [resolvable:$true] %s2027_s19 }
 0x82a   :  { %p2780_p1 = scmp.lt.s32.totalorder %s2028_s19, %s2028_s19 }
 0x832   :  { %v2774_v48 = vpop.eup %2773 }
 0x833   :  { %v1474_v52 = vmul.f32 %v2774_v48, %v2772_v46 }
 0x835   :  { %v1950_v55 = vcombine.high %v1474_v52, %v1474_v52  ;;  %v1957_v58 = vrot.slane %v1474_v52, %v3186_v54  ;;  %2019 = vst [vmem:[%s3566_s5] sm:$0xff] %v1474_v52  ;;  %s2775_s5 = scalar_lea.vmem %s2028_s19, 1024 }
 0x836   :  { %p2776_p0 = scmp.ne.s32.totalorder %s2028_s19, %s2775_s5  ;;  %p2781_p2 = scmp.lt.s32.totalorder %s2775_s5, %s2775_s5 }
 0x837   :  { %v1964_v62 = vrot.slane %v1950_v55, %v3186_v54  ;;  %v1965_v0 = vcombine.high %v1957_v58, %v1957_v58  ;;  %v1973_v6 = vrot.slane %v1957_v58, %v3186_v54  ;;  %2126 = vst.sshfl [vmem:[#allocation5 + $0x7] sm:$0x1 pattern:$0x73625140] %v1957_v58 }
 0x838   :  { %p2782_p3 = por %p2781_p2, %p2780_p1 }
 0x839   :  { %v1966_v11 = vcombine.high %v1964_v62, %v1964_v62  ;;  %v1980_v16 = vrot.slane %v1964_v62, %v3186_v54  ;;  %v1987_v18 = vrot.slane %v1965_v0, %v3186_v54  ;;  %v1995_v24 = vcombine.high %v1973_v6, %v1973_v6  ;;  %2127 = vst.sshfl [vmem:[#allocation5 + $0xf] sm:$0x1 pattern:$0x73625140] %v1965_v0 }
 0x83a   :  { %2128 = vst.sshfl [vmem:[#allocation5 + $0x27] sm:$0x1 pattern:$0x73625140] %v1964_v62  ;;  %p2783_p4 = pnand %p2782_p3, %p2776_p0 }
 0x83b   :  { %v1994_v27 = vrot.slane %v1966_v11, %v3186_v54  ;;  %v1996_v31 = vcombine.high %v1980_v16, %v1980_v16  ;;  %v1997_v32 = vcombine.high %v1987_v18, %v1987_v18  ;;  %2009 = vst [vmem:[#allocation5 + $0x17] sm:$0x1] %v1995_v24  ;;  %2129 = vst.sshfl [vmem:[#allocation5 + $0x2f] sm:$0x1 pattern:$0x73625140] %v1966_v11 }
 0x83d   :  { %v1998_v39 = vcombine.high %v1994_v27, %v1994_v27  ;;  %2010 = vst [vmem:[#allocation5 + $0x1f] sm:$0x1] %v1997_v32  ;;  %2013 = vst [vmem:[#allocation5 + $0x37] sm:$0x1] %v1996_v31 }
 0x83f   :  { %2014 = vst [vmem:[#allocation5 + $0x3f] sm:$0x1] %v1998_v39 }
 0x840   :  { %2786 = shalt.err (!%p2783_p4)
}
 0x841   :  { %s2787_s22 = scalar_lea.hbm %s3565_s4, 1024 }
 0x842   :  { %p2788_p5 = scmp.ne.s32.totalorder %s3565_s4, %s2787_s22  ;;  %p2791_p6 = scmp.lt.u32.totalorder %s2787_s22, %s3565_s4 }
 0x844   :  { %p2793_p7 = pnand %p2791_p6, %p2788_p5 }
 0x846   :  { %2796 = shalt.err (!%p2793_p7)
}
 0x847   :  { %s2802_s27 = smov 128   ;;  %s2803_s28 = smov 8  }
 0x848   :  { %2033 = dma.vmem_to_hbm [thread:$0]  %s2028_s19, 1024, %s3565_s4, [#allocation6], %s2802_s27, %s2802_s27, %s2803_s28  }
 0x849   :  { %2797 = dma.done.wait [#allocation6], 1024  }
 0x84a   :  { %2798 = vsyncadd [#allocation6], 4294966272 }
 0x84b   :  { %2045 = vsyncpa [#allocation6], 1 }

</bundles_post_ra>
